<compile_context>
chip_gen: v5e
topology: v5e:2x2
jax: 0.10.0
libtpu: 0.0.40
codegen_flags: <defaults>
</compile_context>

<pallas_src>
import functools

import jax
import jax.numpy as jnp
from jax import lax
from jax.experimental import pallas as pl
from jax.experimental.pallas import tpu as pltpu

# ---- model hyper-params (small, consistent with the module) -----------------
D_MODEL = 32
NHEAD = 4
DIM_FF = 64          # dim_feedforward (small instead of 2048)
NEWS_IN = 64         # news_in_dim (small instead of 640)
MLP_H1 = 768         # fixed in the module's nn.Sequential
MLP_H2 = 384         # fixed in the module's nn.Sequential
LN_EPS = 1e-5

# rows of the packed (6, D) bundle of D-wide parameter vectors
_ROW_BO, _ROW_B2, _ROW_G1, _ROW_BE1, _ROW_G2, _ROW_BE2 = range(6)


# --------------------------- fused encoder kernel ----------------------------
def fused_encoder_kernel(
    x_ref, news_ref,
    mw1_ref, mb1_ref, mw2_ref, mb2_ref, mw3_ref, mb3_ref,
    wqkv_ref, bqkv_ref, wo_ref, w1_ref, b1_ref, w2_ref, dvec_ref,
    out_ref,
    *, bb, seq_len,
):
    S = seq_len
    D = D_MODEL
    H = NHEAD
    hd = D // H
    N = bb * S                                   # flattened rows this step

    x3 = x_ref[...].astype(jnp.float32)          # (BB, S, D)
    x = x3.reshape(N, D)

    # ---- news MLP: 64 -> 768 -> ReLU -> 384 -> ReLU -> D ----
    # bf16 MXU inputs, f32 accumulation; biases / epilogue stay f32 (v5e VPU).
    news = news_ref[...].reshape(bb, NEWS_IN).astype(jnp.bfloat16)
    h1 = jnp.maximum(
        jnp.dot(news, mw1_ref[...], preferred_element_type=jnp.float32)
        + mb1_ref[...], 0.0)
    h2 = jnp.maximum(
        jnp.dot(h1.astype(jnp.bfloat16), mw2_ref[...],
                preferred_element_type=jnp.float32) + mb2_ref[...], 0.0)
    m = (jnp.dot(h2.astype(jnp.bfloat16), mw3_ref[...],
                 preferred_element_type=jnp.float32) + mb3_ref[...])  # (BB, D)
    # replicate over the sequence (cheap sublane broadcast, done once)
    m_rows = jnp.broadcast_to(m[:, None, :], (bb, S, D)).reshape(N, D)

    # ---- fused QKV projection (1/sqrt(hd) pre-folded into Q columns) ----
    qkv = (jnp.dot(x, wqkv_ref[...], preferred_element_type=jnp.float32)
           + bqkv_ref[...])                                           # (N, 3D)
    q = qkv[:, :D].reshape(bb, S, D)
    k = qkv[:, D:2 * D].reshape(bb, S, D)
    v = qkv[:, 2 * D:].reshape(bb, S, D)

    dvec = dvec_ref[...]                                              # (6, D)

    # ---- per-head batched attention, accumulated through the out-proj ----
    acc = jnp.broadcast_to(dvec[_ROW_BO:_ROW_BO + 1, :], (N, D))      # bias bo
    for h in range(H):                                                # static
        sl = slice(h * hd, (h + 1) * hd)
        s = jnp.einsum('bqd,bkd->bqk', q[..., sl], k[..., sl],
                       preferred_element_type=jnp.float32)           # (BB,S,S)
        s = s - jnp.max(s, axis=-1, keepdims=True)
        p = jnp.exp(s)
        inv = pl.reciprocal(jnp.sum(p, axis=-1, keepdims=True), approx=True)
        o_h = jnp.einsum('bqk,bkd->bqd', p * inv, v[..., sl],
                         preferred_element_type=jnp.float32)          # (BB,S,hd)
        acc = acc + jnp.dot(o_h.reshape(N, hd), wo_ref[sl, :],
                            preferred_element_type=jnp.float32)

    # ---- residual + norm1 (dropouts are identity at inference) ----
    x1 = m_rows + acc + x
    mu1 = jnp.mean(x1, axis=-1, keepdims=True)
    var1 = jnp.mean((x1 - mu1) ** 2, axis=-1, keepdims=True)
    x1n = ((x1 - mu1) * lax.rsqrt(var1 + LN_EPS)
           * dvec[_ROW_G1:_ROW_G1 + 1, :] + dvec[_ROW_BE1:_ROW_BE1 + 1, :])

    # ---- feed-forward ----
    ff = jnp.maximum(
        jnp.dot(x1n, w1_ref[...], preferred_element_type=jnp.float32)
        + b1_ref[...], 0.0)
    ff = (jnp.dot(ff, w2_ref[...], preferred_element_type=jnp.float32)
          + dvec[_ROW_B2:_ROW_B2 + 1, :])

    # ---- residual + norm2 (module adds the news vector a second time) ----
    x2 = ff + m_rows + x1n
    mu2 = jnp.mean(x2, axis=-1, keepdims=True)
    var2 = jnp.mean((x2 - mu2) ** 2, axis=-1, keepdims=True)
    out = ((x2 - mu2) * lax.rsqrt(var2 + LN_EPS)
           * dvec[_ROW_G2:_ROW_G2 + 1, :] + dvec[_ROW_BE2:_ROW_BE2 + 1, :])

    out_ref[...] = out.reshape(bb, S, D).astype(out_ref.dtype)


# ------------------------------ wrapper --------------------------------------
def _full_spec(arr):
    zeros = (0,) * arr.ndim
    return pl.BlockSpec(arr.shape, lambda b, _z=zeros: _z)


def _tensorcores_per_chip():
    """2 on dual-TC v7x, 1 on v5e/v6e (and on detection failure)."""
    try:
        kind = jax.devices()[0].device_kind.lower()
    except Exception:
        return 1
    return 2 if ("v7" in kind or "7x" in kind) else 1


def _target_grid_steps(batch, seq, max_rows_per_step=512):
    # Single step on 1-TC chips (extra steps are pure per-step overhead);
    # >=2 steps on v7x so the parallel grid axis shards across TensorCores.
    steps = max(_tensorcores_per_chip(),
                (batch * seq + max_rows_per_step - 1) // max_rows_per_step)
    return min(steps, batch)


def _pick_block_batch(batch, target_steps):
    if target_steps <= 1:
        return batch
    for d in range(batch // target_steps, 0, -1):   # largest divisor of batch
        if batch % d == 0:                          # giving >= target_steps
            return d
    return batch


def pack_params(p):
    """Pack / pre-scale parameters once, outside the forward pass."""
    scale = 1.0 / float(D_MODEL // NHEAD) ** 0.5
    bf16 = jnp.bfloat16
    return {
        # fused QKV with the softmax scale folded into the Q columns
        "wqkv": jnp.concatenate([p["wq"] * scale, p["wk"], p["wv"]], axis=1),
        "bqkv": jnp.concatenate([p["bq"] * scale, p["bk"], p["bv"]], axis=1),
        "wo": p["wo"],
        "w1": p["w1"], "b1": p["b1"], "w2": p["w2"],
        # every D-wide parameter vector in one (6, D) bundle
        "dvec": jnp.concatenate([p["bo"], p["b2"], p["g1"], p["be1"],
                                 p["g2"], p["be2"]], axis=0),
        # news-MLP weights in bf16 for the MXU (accumulation stays f32)
        "mw1": p["mw1"].astype(bf16), "mb1": p["mb1"],
        "mw2": p["mw2"].astype(bf16), "mb2": p["mb2"],
        "mw3": p["mw3"].astype(bf16), "mb3": p["mb3"],
    }


def custom_transformer_encoder_layer(x_nonnews, x_news, packed):
    B, S, D = x_nonnews.shape
    bb = _pick_block_batch(B, _target_grid_steps(B, S))
    news3 = x_news.reshape(B, 1, NEWS_IN)    # 3-D so any BB block is legal

    weights = [packed["mw1"], packed["mb1"], packed["mw2"], packed["mb2"],
               packed["mw3"], packed["mb3"],
               packed["wqkv"], packed["bqkv"], packed["wo"],
               packed["w1"], packed["b1"], packed["w2"], packed["dvec"]]

    in_specs = [
        pl.BlockSpec((bb, S, D), lambda b: (b, 0, 0)),        # x block
        pl.BlockSpec((bb, 1, NEWS_IN), lambda b: (b, 0, 0)),  # news block
    ] + [_full_spec(w) for w in weights]      # constant index_map -> DMA once

    kernel = functools.partial(fused_encoder_kernel, bb=bb, seq_len=S)
    return pl.pallas_call(
        kernel,
        out_shape=jax.ShapeDtypeStruct((B, S, D), x_nonnews.dtype),
        grid_spec=pltpu.PrefetchScalarGridSpec(
            num_scalar_prefetch=0,
            grid=(B // bb,),
            in_specs=in_specs,
            out_specs=pl.BlockSpec((bb, S, D), lambda b: (b, 0, 0)),
        ),
        compiler_params=pltpu.CompilerParams(
            dimension_semantics=("parallel",)),
    )(x_nonnews, news3, *weights)


# ---------------- pure-JAX reference (for correctness check) ----------------
def _layernorm(x, g, b):
    mu = jnp.mean(x, axis=-1, keepdims=True)
    var = jnp.mean((x - mu) ** 2, axis=-1, keepdims=True)
    return (x - mu) * lax.rsqrt(var + LN_EPS) * g + b


def ref_forward(x, news, p):
    B, S, D = x.shape
    H, hd = NHEAD, D // NHEAD
    q = (x @ p["wq"] + p["bq"]).reshape(B, S, H, hd)
    k = (x @ p["wk"] + p["bk"]).reshape(B, S, H, hd)
    v = (x @ p["wv"] + p["bv"]).reshape(B, S, H, hd)
    s = jnp.einsum("bqhd,bkhd->bhqk", q, k) / jnp.sqrt(float(hd))
    a = jnp.einsum("bhqk,bkhd->bqhd", jax.nn.softmax(s, axis=-1),
                   v).reshape(B, S, D)
    attn_out = a @ p["wo"] + p["bo"]

    h1 = jax.nn.relu(news @ p["mw1"] + p["mb1"])
    h2 = jax.nn.relu(h1 @ p["mw2"] + p["mb2"])
    m = (h2 @ p["mw3"] + p["mb3"])[:, None, :]

    x1 = m + attn_out + x
    x1n = _layernorm(x1, p["g1"], p["be1"])
    ff = jax.nn.relu(x1n @ p["w1"] + p["b1"]) @ p["w2"] + p["b2"]
    x2 = ff + m + x1n
    return _layernorm(x2, p["g2"], p["be2"])


def init_params(key):
    ks = jax.random.split(key, 16)
    f32 = jnp.float32
    n = lambda k, shape, scale=0.02: scale * jax.random.normal(k, shape, dtype=f32)
    D, F = D_MODEL, DIM_FF
    return {
        # self-attention (in_proj split into q/k/v) + out_proj
        "wq": n(ks[0], (D, D)), "bq": jnp.zeros((1, D), f32),
        "wk": n(ks[1], (D, D)), "bk": jnp.zeros((1, D), f32),
        "wv": n(ks[2], (D, D)), "bv": jnp.zeros((1, D), f32),
        "wo": n(ks[3], (D, D)), "bo": n(ks[4], (1, D)),
        # feed-forward
        "w1": n(ks[5], (D, F)), "b1": n(ks[6], (1, F)),
        "w2": n(ks[7], (F, D)), "b2": n(ks[8], (1, D)),
        # layer norms
        "g1": jnp.ones((1, D), f32), "be1": jnp.zeros((1, D), f32),
        "g2": jnp.ones((1, D), f32), "be2": jnp.zeros((1, D), f32),
        # news MLP: NEWS_IN -> 768 -> ReLU -> 384 -> ReLU -> D
        "mw1": n(ks[9], (NEWS_IN, MLP_H1)), "mb1": n(ks[10], (1, MLP_H1)),
        "mw2": n(ks[11], (MLP_H1, MLP_H2)), "mb2": n(ks[12], (1, MLP_H2)),
        "mw3": n(ks[13], (MLP_H2, D)),      "mb3": n(ks[14], (1, D)),
    }


if __name__ == "__main__":
    key = jax.random.PRNGKey(0)
    k_x, k_news, k_p, k_x2, k_news2 = jax.random.split(key, 5)
    params = init_params(k_p)
    packed = pack_params(params)      # pack / pre-scale once, outside forward

    # tolerance covers the EUP approximate softmax reciprocal + bf16 MLP matmuls
    ATOL = RTOL = 2e-3

    # primary small case: B=2, S=8
    B, S = 2, 8
    x_nonnews = jax.random.normal(k_x, (B, S, D_MODEL), dtype=jnp.float32)
    x_news = jax.random.normal(k_news, (B, NEWS_IN), dtype=jnp.float32)

    out = jax.block_until_ready(
        custom_transformer_encoder_layer(x_nonnews, x_news, packed))
    ref = jax.block_until_ready(ref_forward(x_nonnews, x_news, params))
    assert out.shape == (B, S, D_MODEL)
    assert jnp.allclose(out, ref, atol=ATOL, rtol=RTOL), (
        f"max abs err {jnp.max(jnp.abs(out - ref))}")

    # larger batch exercises the multi-sequence-per-block batched attention
    B2 = 16
    x2 = jax.random.normal(k_x2, (B2, S, D_MODEL), dtype=jnp.float32)
    n2 = jax.random.normal(k_news2, (B2, NEWS_IN), dtype=jnp.float32)
    out2 = jax.block_until_ready(
        custom_transformer_encoder_layer(x2, n2, packed))
    ref2 = jax.block_until_ready(ref_forward(x2, n2, params))
    assert jnp.allclose(out2, ref2, atol=ATOL, rtol=RTOL), (
        f"max abs err {jnp.max(jnp.abs(out2 - ref2))}")

    print("KERNEL_OK")
</pallas_src>

<mosaic_0001>
module attributes {stable_mosaic.version = 11 : i64} {
  func.func @fused_encoder_kernel(%arg0: i32, %arg1: memref<2x8x32xf32, #tpu.memory_space<vmem>>, %arg2: memref<2x1x64xf32, #tpu.memory_space<vmem>>, %arg3: memref<64x768xbf16, #tpu.memory_space<vmem>>, %arg4: memref<1x768xf32, #tpu.memory_space<vmem>>, %arg5: memref<768x384xbf16, #tpu.memory_space<vmem>>, %arg6: memref<1x384xf32, #tpu.memory_space<vmem>>, %arg7: memref<384x32xbf16, #tpu.memory_space<vmem>>, %arg8: memref<1x32xf32, #tpu.memory_space<vmem>>, %arg9: memref<32x96xf32, #tpu.memory_space<vmem>>, %arg10: memref<1x96xf32, #tpu.memory_space<vmem>>, %arg11: memref<32x32xf32, #tpu.memory_space<vmem>>, %arg12: memref<32x64xf32, #tpu.memory_space<vmem>>, %arg13: memref<1x64xf32, #tpu.memory_space<vmem>>, %arg14: memref<64x32xf32, #tpu.memory_space<vmem>>, %arg15: memref<6x32xf32, #tpu.memory_space<vmem>>, %arg16: memref<2x8x32xf32, #tpu.memory_space<vmem>>) attributes {dimension_semantics = [#tpu.dimension_semantics<parallel>], iteration_bounds = array<i64: 1>, scalar_prefetch = 0 : i64, scratch_operands = 0 : i64, tpu.core_type = #tpu.core_type<tc>, window_params = [{transform_indices = @transform_0, window_bounds = array<i64: 2, 8, 32>}, {transform_indices = @transform_1, window_bounds = array<i64: 2, 1, 64>}, {pipeline_mode = #tpu.pipeline_mode<synchronous>, transform_indices = @transform_2, window_bounds = array<i64: 64, 768>}, {pipeline_mode = #tpu.pipeline_mode<synchronous>, transform_indices = @transform_3, window_bounds = array<i64: 1, 768>}, {pipeline_mode = #tpu.pipeline_mode<synchronous>, transform_indices = @transform_4, window_bounds = array<i64: 768, 384>}, {pipeline_mode = #tpu.pipeline_mode<synchronous>, transform_indices = @transform_5, window_bounds = array<i64: 1, 384>}, {pipeline_mode = #tpu.pipeline_mode<synchronous>, transform_indices = @transform_6, window_bounds = array<i64: 384, 32>}, {pipeline_mode = #tpu.pipeline_mode<synchronous>, transform_indices = @transform_7, window_bounds = array<i64: 1, 32>}, {pipeline_mode = #tpu.pipeline_mode<synchronous>, transform_indices = @transform_8, window_bounds = array<i64: 32, 96>}, {pipeline_mode = #tpu.pipeline_mode<synchronous>, transform_indices = @transform_9, window_bounds = array<i64: 1, 96>}, {pipeline_mode = #tpu.pipeline_mode<synchronous>, transform_indices = @transform_10, window_bounds = array<i64: 32, 32>}, {pipeline_mode = #tpu.pipeline_mode<synchronous>, transform_indices = @transform_11, window_bounds = array<i64: 32, 64>}, {pipeline_mode = #tpu.pipeline_mode<synchronous>, transform_indices = @transform_12, window_bounds = array<i64: 1, 64>}, {pipeline_mode = #tpu.pipeline_mode<synchronous>, transform_indices = @transform_13, window_bounds = array<i64: 64, 32>}, {pipeline_mode = #tpu.pipeline_mode<synchronous>, transform_indices = @transform_14, window_bounds = array<i64: 6, 32>}, {transform_indices = @transform_15, window_bounds = array<i64: 2, 8, 32>}]} {
    %c0 = arith.constant 0 : index
    %c0_0 = arith.constant 0 : index
    %c0_1 = arith.constant 0 : index
    %0 = vector.load %arg1[%c0, %c0_0, %c0_1] : memref<2x8x32xf32, #tpu.memory_space<vmem>>, vector<2x8x32xf32>
    %1 = vector.shape_cast %0 : vector<2x8x32xf32> to vector<16x32xf32>
    %c0_2 = arith.constant 0 : index
    %c0_3 = arith.constant 0 : index
    %c0_4 = arith.constant 0 : index
    %2 = vector.load %arg2[%c0_2, %c0_3, %c0_4] : memref<2x1x64xf32, #tpu.memory_space<vmem>>, vector<2x1x64xf32>
    %3 = vector.shape_cast %2 : vector<2x1x64xf32> to vector<2x64xf32>
    %4 = arith.truncf %3 : vector<2x64xf32> to vector<2x64xbf16>
    %c0_5 = arith.constant 0 : index
    %c0_6 = arith.constant 0 : index
    %5 = vector.load %arg3[%c0_5, %c0_6] : memref<64x768xbf16, #tpu.memory_space<vmem>>, vector<64x768xbf16>
    %cst = arith.constant dense<0.000000e+00> : vector<2x768xf32>
    %6 = tpu.matmul %4, %5, %cst {dimension_numbers = #tpu.dot_dimension_numbers<[1], [0], [0], [1], [0, 0, 1, 1], [], []>} : vector<2x64xbf16>, vector<64x768xbf16>, vector<2x768xf32> -> vector<2x768xf32>
    %c0_7 = arith.constant 0 : index
    %c0_8 = arith.constant 0 : index
    %7 = vector.load %arg4[%c0_7, %c0_8] : memref<1x768xf32, #tpu.memory_space<vmem>>, vector<1x768xf32>
    %8 = vector.broadcast %7 : vector<1x768xf32> to vector<2x768xf32>
    %9 = arith.addf %6, %8 : vector<2x768xf32>
    %cst_9 = arith.constant 0.000000e+00 : f32
    %10 = vector.broadcast %cst_9 : f32 to vector<2x768xf32>
    %11 = arith.maximumf %9, %10 : vector<2x768xf32>
    %12 = arith.truncf %11 : vector<2x768xf32> to vector<2x768xbf16>
    %c0_10 = arith.constant 0 : index
    %c0_11 = arith.constant 0 : index
    %13 = vector.load %arg5[%c0_10, %c0_11] : memref<768x384xbf16, #tpu.memory_space<vmem>>, vector<768x384xbf16>
    %cst_12 = arith.constant dense<0.000000e+00> : vector<2x384xf32>
    %14 = tpu.matmul %12, %13, %cst_12 {dimension_numbers = #tpu.dot_dimension_numbers<[1], [0], [0], [1], [0, 0, 1, 1], [], []>} : vector<2x768xbf16>, vector<768x384xbf16>, vector<2x384xf32> -> vector<2x384xf32>
    %c0_13 = arith.constant 0 : index
    %c0_14 = arith.constant 0 : index
    %15 = vector.load %arg6[%c0_13, %c0_14] : memref<1x384xf32, #tpu.memory_space<vmem>>, vector<1x384xf32>
    %16 = vector.broadcast %15 : vector<1x384xf32> to vector<2x384xf32>
    %17 = arith.addf %14, %16 : vector<2x384xf32>
    %cst_15 = arith.constant 0.000000e+00 : f32
    %18 = vector.broadcast %cst_15 : f32 to vector<2x384xf32>
    %19 = arith.maximumf %17, %18 : vector<2x384xf32>
    %20 = arith.truncf %19 : vector<2x384xf32> to vector<2x384xbf16>
    %c0_16 = arith.constant 0 : index
    %c0_17 = arith.constant 0 : index
    %21 = vector.load %arg7[%c0_16, %c0_17] : memref<384x32xbf16, #tpu.memory_space<vmem>>, vector<384x32xbf16>
    %cst_18 = arith.constant dense<0.000000e+00> : vector<2x32xf32>
    %22 = tpu.matmul %20, %21, %cst_18 {dimension_numbers = #tpu.dot_dimension_numbers<[1], [0], [0], [1], [0, 0, 1, 1], [], []>} : vector<2x384xbf16>, vector<384x32xbf16>, vector<2x32xf32> -> vector<2x32xf32>
    %c0_19 = arith.constant 0 : index
    %c0_20 = arith.constant 0 : index
    %23 = vector.load %arg8[%c0_19, %c0_20] : memref<1x32xf32, #tpu.memory_space<vmem>>, vector<1x32xf32>
    %24 = vector.broadcast %23 : vector<1x32xf32> to vector<2x32xf32>
    %25 = arith.addf %22, %24 : vector<2x32xf32>
    %26 = vector.shape_cast %25 : vector<2x32xf32> to vector<2x1x32xf32>
    %27 = vector.shape_cast %26 : vector<2x1x32xf32> to vector<2x1x32xf32>
    %28 = vector.broadcast %27 : vector<2x1x32xf32> to vector<2x8x32xf32>
    %29 = vector.shape_cast %28 : vector<2x8x32xf32> to vector<16x32xf32>
    %c0_21 = arith.constant 0 : index
    %c0_22 = arith.constant 0 : index
    %30 = vector.load %arg9[%c0_21, %c0_22] : memref<32x96xf32, #tpu.memory_space<vmem>>, vector<32x96xf32>
    %cst_23 = arith.constant dense<0.000000e+00> : vector<16x96xf32>
    %31 = tpu.matmul %1, %30, %cst_23 {dimension_numbers = #tpu.dot_dimension_numbers<[1], [0], [0], [1], [0, 0, 1, 1], [], []>} : vector<16x32xf32>, vector<32x96xf32>, vector<16x96xf32> -> vector<16x96xf32>
    %c0_24 = arith.constant 0 : index
    %c0_25 = arith.constant 0 : index
    %32 = vector.load %arg10[%c0_24, %c0_25] : memref<1x96xf32, #tpu.memory_space<vmem>>, vector<1x96xf32>
    %33 = vector.broadcast %32 : vector<1x96xf32> to vector<16x96xf32>
    %34 = arith.addf %31, %33 : vector<16x96xf32>
    %35 = vector.extract_strided_slice %34 {offsets = [0, 0], sizes = [16, 32], strides = [1, 1]} : vector<16x96xf32> to vector<16x32xf32>
    %36 = vector.shape_cast %35 : vector<16x32xf32> to vector<2x8x32xf32>
    %37 = vector.extract_strided_slice %34 {offsets = [0, 32], sizes = [16, 32], strides = [1, 1]} : vector<16x96xf32> to vector<16x32xf32>
    %38 = vector.shape_cast %37 : vector<16x32xf32> to vector<2x8x32xf32>
    %39 = vector.extract_strided_slice %34 {offsets = [0, 64], sizes = [16, 32], strides = [1, 1]} : vector<16x96xf32> to vector<16x32xf32>
    %40 = vector.shape_cast %39 : vector<16x32xf32> to vector<2x8x32xf32>
    %c0_26 = arith.constant 0 : index
    %c0_27 = arith.constant 0 : index
    %41 = vector.load %arg15[%c0_26, %c0_27] : memref<6x32xf32, #tpu.memory_space<vmem>>, vector<6x32xf32>
    %42 = vector.extract_strided_slice %41 {offsets = [0, 0], sizes = [1, 32], strides = [1, 1]} : vector<6x32xf32> to vector<1x32xf32>
    %43 = vector.shape_cast %42 : vector<1x32xf32> to vector<1x32xf32>
    %44 = vector.broadcast %43 : vector<1x32xf32> to vector<16x32xf32>
    %45 = vector.extract_strided_slice %36 {offsets = [0, 0, 0], sizes = [2, 8, 8], strides = [1, 1, 1]} : vector<2x8x32xf32> to vector<2x8x8xf32>
    %46 = vector.extract_strided_slice %38 {offsets = [0, 0, 0], sizes = [2, 8, 8], strides = [1, 1, 1]} : vector<2x8x32xf32> to vector<2x8x8xf32>
    "tpu.trace_start"() <{level = 10 : i32, message = "bqd,bkd->bqk"}> : () -> ()
    %cst_28 = arith.constant dense<0.000000e+00> : vector<2x8x8xf32>
    %47 = tpu.matmul %45, %46, %cst_28 {dimension_numbers = #tpu.dot_dimension_numbers<[2], [2], [1], [1], [0, 0, 0, 1, 1, 1], [0], [0]>} : vector<2x8x8xf32>, vector<2x8x8xf32>, vector<2x8x8xf32> -> vector<2x8x8xf32>
    "tpu.trace_stop"() : () -> ()
    %cst_29 = arith.constant dense<0xFF800000> : vector<2x8xf32>
    %48 = vector.multi_reduction <maximumf>, %47, %cst_29 [2] : vector<2x8x8xf32> to vector<2x8xf32>
    %49 = vector.shape_cast %48 : vector<2x8xf32> to vector<2x8x1xf32>
    %50 = vector.broadcast %49 : vector<2x8x1xf32> to vector<2x8x8xf32>
    %51 = arith.subf %47, %50 : vector<2x8x8xf32>
    %52 = math.exp %51 : vector<2x8x8xf32>
    %cst_30 = arith.constant dense<0.000000e+00> : vector<2x8xf32>
    %53 = vector.multi_reduction <add>, %52, %cst_30 [2] : vector<2x8x8xf32> to vector<2x8xf32>
    %54 = vector.shape_cast %53 : vector<2x8xf32> to vector<2x8x1xf32>
    %55 = tpu.reciprocal %54 {approx = true} : vector<2x8x1xf32> -> vector<2x8x1xf32>
    %56 = vector.broadcast %55 : vector<2x8x1xf32> to vector<2x8x8xf32>
    %57 = arith.mulf %52, %56 : vector<2x8x8xf32>
    %58 = vector.extract_strided_slice %40 {offsets = [0, 0, 0], sizes = [2, 8, 8], strides = [1, 1, 1]} : vector<2x8x32xf32> to vector<2x8x8xf32>
    "tpu.trace_start"() <{level = 10 : i32, message = "bqk,bkd->bqd"}> : () -> ()
    %cst_31 = arith.constant dense<0.000000e+00> : vector<2x8x8xf32>
    %59 = tpu.matmul %57, %58, %cst_31 {dimension_numbers = #tpu.dot_dimension_numbers<[2], [1], [1], [2], [0, 0, 0, 1, 1, 2], [0], [0]>} : vector<2x8x8xf32>, vector<2x8x8xf32>, vector<2x8x8xf32> -> vector<2x8x8xf32>
    "tpu.trace_stop"() : () -> ()
    %60 = vector.shape_cast %59 : vector<2x8x8xf32> to vector<16x8xf32>
    %c0_32 = arith.constant 0 : index
    %c0_33 = arith.constant 0 : index
    %61 = vector.load %arg11[%c0_32, %c0_33] : memref<32x32xf32, #tpu.memory_space<vmem>>, vector<8x32xf32>
    %cst_34 = arith.constant dense<0.000000e+00> : vector<16x32xf32>
    %62 = tpu.matmul %60, %61, %cst_34 {dimension_numbers = #tpu.dot_dimension_numbers<[1], [0], [0], [1], [0, 0, 1, 1], [], []>} : vector<16x8xf32>, vector<8x32xf32>, vector<16x32xf32> -> vector<16x32xf32>
    %63 = arith.addf %44, %62 : vector<16x32xf32>
    %64 = vector.extract_strided_slice %36 {offsets = [0, 0, 8], sizes = [2, 8, 8], strides = [1, 1, 1]} : vector<2x8x32xf32> to vector<2x8x8xf32>
    %65 = vector.extract_strided_slice %38 {offsets = [0, 0, 8], sizes = [2, 8, 8], strides = [1, 1, 1]} : vector<2x8x32xf32> to vector<2x8x8xf32>
    "tpu.trace_start"() <{level = 10 : i32, message = "bqd,bkd->bqk"}> : () -> ()
    %cst_35 = arith.constant dense<0.000000e+00> : vector<2x8x8xf32>
    %66 = tpu.matmul %64, %65, %cst_35 {dimension_numbers = #tpu.dot_dimension_numbers<[2], [2], [1], [1], [0, 0, 0, 1, 1, 1], [0], [0]>} : vector<2x8x8xf32>, vector<2x8x8xf32>, vector<2x8x8xf32> -> vector<2x8x8xf32>
    "tpu.trace_stop"() : () -> ()
    %cst_36 = arith.constant dense<0xFF800000> : vector<2x8xf32>
    %67 = vector.multi_reduction <maximumf>, %66, %cst_36 [2] : vector<2x8x8xf32> to vector<2x8xf32>
    %68 = vector.shape_cast %67 : vector<2x8xf32> to vector<2x8x1xf32>
    %69 = vector.broadcast %68 : vector<2x8x1xf32> to vector<2x8x8xf32>
    %70 = arith.subf %66, %69 : vector<2x8x8xf32>
    %71 = math.exp %70 : vector<2x8x8xf32>
    %cst_37 = arith.constant dense<0.000000e+00> : vector<2x8xf32>
    %72 = vector.multi_reduction <add>, %71, %cst_37 [2] : vector<2x8x8xf32> to vector<2x8xf32>
    %73 = vector.shape_cast %72 : vector<2x8xf32> to vector<2x8x1xf32>
    %74 = tpu.reciprocal %73 {approx = true} : vector<2x8x1xf32> -> vector<2x8x1xf32>
    %75 = vector.broadcast %74 : vector<2x8x1xf32> to vector<2x8x8xf32>
    %76 = arith.mulf %71, %75 : vector<2x8x8xf32>
    %77 = vector.extract_strided_slice %40 {offsets = [0, 0, 8], sizes = [2, 8, 8], strides = [1, 1, 1]} : vector<2x8x32xf32> to vector<2x8x8xf32>
    "tpu.trace_start"() <{level = 10 : i32, message = "bqk,bkd->bqd"}> : () -> ()
    %cst_38 = arith.constant dense<0.000000e+00> : vector<2x8x8xf32>
    %78 = tpu.matmul %76, %77, %cst_38 {dimension_numbers = #tpu.dot_dimension_numbers<[2], [1], [1], [2], [0, 0, 0, 1, 1, 2], [0], [0]>} : vector<2x8x8xf32>, vector<2x8x8xf32>, vector<2x8x8xf32> -> vector<2x8x8xf32>
    "tpu.trace_stop"() : () -> ()
    %79 = vector.shape_cast %78 : vector<2x8x8xf32> to vector<16x8xf32>
    %c8 = arith.constant 8 : index
    %c0_39 = arith.constant 0 : index
    %80 = vector.load %arg11[%c8, %c0_39] : memref<32x32xf32, #tpu.memory_space<vmem>>, vector<8x32xf32>
    %cst_40 = arith.constant dense<0.000000e+00> : vector<16x32xf32>
    %81 = tpu.matmul %79, %80, %cst_40 {dimension_numbers = #tpu.dot_dimension_numbers<[1], [0], [0], [1], [0, 0, 1, 1], [], []>} : vector<16x8xf32>, vector<8x32xf32>, vector<16x32xf32> -> vector<16x32xf32>
    %82 = arith.addf %63, %81 : vector<16x32xf32>
    %83 = vector.extract_strided_slice %36 {offsets = [0, 0, 16], sizes = [2, 8, 8], strides = [1, 1, 1]} : vector<2x8x32xf32> to vector<2x8x8xf32>
    %84 = vector.extract_strided_slice %38 {offsets = [0, 0, 16], sizes = [2, 8, 8], strides = [1, 1, 1]} : vector<2x8x32xf32> to vector<2x8x8xf32>
    "tpu.trace_start"() <{level = 10 : i32, message = "bqd,bkd->bqk"}> : () -> ()
    %cst_41 = arith.constant dense<0.000000e+00> : vector<2x8x8xf32>
    %85 = tpu.matmul %83, %84, %cst_41 {dimension_numbers = #tpu.dot_dimension_numbers<[2], [2], [1], [1], [0, 0, 0, 1, 1, 1], [0], [0]>} : vector<2x8x8xf32>, vector<2x8x8xf32>, vector<2x8x8xf32> -> vector<2x8x8xf32>
    "tpu.trace_stop"() : () -> ()
    %cst_42 = arith.constant dense<0xFF800000> : vector<2x8xf32>
    %86 = vector.multi_reduction <maximumf>, %85, %cst_42 [2] : vector<2x8x8xf32> to vector<2x8xf32>
    %87 = vector.shape_cast %86 : vector<2x8xf32> to vector<2x8x1xf32>
    %88 = vector.broadcast %87 : vector<2x8x1xf32> to vector<2x8x8xf32>
    %89 = arith.subf %85, %88 : vector<2x8x8xf32>
    %90 = math.exp %89 : vector<2x8x8xf32>
    %cst_43 = arith.constant dense<0.000000e+00> : vector<2x8xf32>
    %91 = vector.multi_reduction <add>, %90, %cst_43 [2] : vector<2x8x8xf32> to vector<2x8xf32>
    %92 = vector.shape_cast %91 : vector<2x8xf32> to vector<2x8x1xf32>
    %93 = tpu.reciprocal %92 {approx = true} : vector<2x8x1xf32> -> vector<2x8x1xf32>
    %94 = vector.broadcast %93 : vector<2x8x1xf32> to vector<2x8x8xf32>
    %95 = arith.mulf %90, %94 : vector<2x8x8xf32>
    %96 = vector.extract_strided_slice %40 {offsets = [0, 0, 16], sizes = [2, 8, 8], strides = [1, 1, 1]} : vector<2x8x32xf32> to vector<2x8x8xf32>
    "tpu.trace_start"() <{level = 10 : i32, message = "bqk,bkd->bqd"}> : () -> ()
    %cst_44 = arith.constant dense<0.000000e+00> : vector<2x8x8xf32>
    %97 = tpu.matmul %95, %96, %cst_44 {dimension_numbers = #tpu.dot_dimension_numbers<[2], [1], [1], [2], [0, 0, 0, 1, 1, 2], [0], [0]>} : vector<2x8x8xf32>, vector<2x8x8xf32>, vector<2x8x8xf32> -> vector<2x8x8xf32>
    "tpu.trace_stop"() : () -> ()
    %98 = vector.shape_cast %97 : vector<2x8x8xf32> to vector<16x8xf32>
    %c16 = arith.constant 16 : index
    %c0_45 = arith.constant 0 : index
    %99 = vector.load %arg11[%c16, %c0_45] : memref<32x32xf32, #tpu.memory_space<vmem>>, vector<8x32xf32>
    %cst_46 = arith.constant dense<0.000000e+00> : vector<16x32xf32>
    %100 = tpu.matmul %98, %99, %cst_46 {dimension_numbers = #tpu.dot_dimension_numbers<[1], [0], [0], [1], [0, 0, 1, 1], [], []>} : vector<16x8xf32>, vector<8x32xf32>, vector<16x32xf32> -> vector<16x32xf32>
    %101 = arith.addf %82, %100 : vector<16x32xf32>
    %102 = vector.extract_strided_slice %36 {offsets = [0, 0, 24], sizes = [2, 8, 8], strides = [1, 1, 1]} : vector<2x8x32xf32> to vector<2x8x8xf32>
    %103 = vector.extract_strided_slice %38 {offsets = [0, 0, 24], sizes = [2, 8, 8], strides = [1, 1, 1]} : vector<2x8x32xf32> to vector<2x8x8xf32>
    "tpu.trace_start"() <{level = 10 : i32, message = "bqd,bkd->bqk"}> : () -> ()
    %cst_47 = arith.constant dense<0.000000e+00> : vector<2x8x8xf32>
    %104 = tpu.matmul %102, %103, %cst_47 {dimension_numbers = #tpu.dot_dimension_numbers<[2], [2], [1], [1], [0, 0, 0, 1, 1, 1], [0], [0]>} : vector<2x8x8xf32>, vector<2x8x8xf32>, vector<2x8x8xf32> -> vector<2x8x8xf32>
    "tpu.trace_stop"() : () -> ()
    %cst_48 = arith.constant dense<0xFF800000> : vector<2x8xf32>
    %105 = vector.multi_reduction <maximumf>, %104, %cst_48 [2] : vector<2x8x8xf32> to vector<2x8xf32>
    %106 = vector.shape_cast %105 : vector<2x8xf32> to vector<2x8x1xf32>
    %107 = vector.broadcast %106 : vector<2x8x1xf32> to vector<2x8x8xf32>
    %108 = arith.subf %104, %107 : vector<2x8x8xf32>
    %109 = math.exp %108 : vector<2x8x8xf32>
    %cst_49 = arith.constant dense<0.000000e+00> : vector<2x8xf32>
    %110 = vector.multi_reduction <add>, %109, %cst_49 [2] : vector<2x8x8xf32> to vector<2x8xf32>
    %111 = vector.shape_cast %110 : vector<2x8xf32> to vector<2x8x1xf32>
    %112 = tpu.reciprocal %111 {approx = true} : vector<2x8x1xf32> -> vector<2x8x1xf32>
    %113 = vector.broadcast %112 : vector<2x8x1xf32> to vector<2x8x8xf32>
    %114 = arith.mulf %109, %113 : vector<2x8x8xf32>
    %115 = vector.extract_strided_slice %40 {offsets = [0, 0, 24], sizes = [2, 8, 8], strides = [1, 1, 1]} : vector<2x8x32xf32> to vector<2x8x8xf32>
    "tpu.trace_start"() <{level = 10 : i32, message = "bqk,bkd->bqd"}> : () -> ()
    %cst_50 = arith.constant dense<0.000000e+00> : vector<2x8x8xf32>
    %116 = tpu.matmul %114, %115, %cst_50 {dimension_numbers = #tpu.dot_dimension_numbers<[2], [1], [1], [2], [0, 0, 0, 1, 1, 2], [0], [0]>} : vector<2x8x8xf32>, vector<2x8x8xf32>, vector<2x8x8xf32> -> vector<2x8x8xf32>
    "tpu.trace_stop"() : () -> ()
    %117 = vector.shape_cast %116 : vector<2x8x8xf32> to vector<16x8xf32>
    %c24 = arith.constant 24 : index
    %c0_51 = arith.constant 0 : index
    %118 = vector.load %arg11[%c24, %c0_51] : memref<32x32xf32, #tpu.memory_space<vmem>>, vector<8x32xf32>
    %cst_52 = arith.constant dense<0.000000e+00> : vector<16x32xf32>
    %119 = tpu.matmul %117, %118, %cst_52 {dimension_numbers = #tpu.dot_dimension_numbers<[1], [0], [0], [1], [0, 0, 1, 1], [], []>} : vector<16x8xf32>, vector<8x32xf32>, vector<16x32xf32> -> vector<16x32xf32>
    %120 = arith.addf %101, %119 : vector<16x32xf32>
    %121 = arith.addf %29, %120 : vector<16x32xf32>
    %122 = arith.addf %121, %1 : vector<16x32xf32>
    %cst_53 = arith.constant dense<0.000000e+00> : vector<16xf32>
    %123 = vector.multi_reduction <add>, %122, %cst_53 [1] : vector<16x32xf32> to vector<16xf32>
    %124 = vector.shape_cast %123 : vector<16xf32> to vector<16x1xf32>
    %cst_54 = arith.constant 3.200000e+01 : f32
    %125 = vector.broadcast %cst_54 : f32 to vector<16x1xf32>
    %126 = arith.divf %124, %125 : vector<16x1xf32>
    %127 = vector.broadcast %126 : vector<16x1xf32> to vector<16x32xf32>
    %128 = arith.subf %122, %127 : vector<16x32xf32>
    %129 = arith.mulf %128, %128 : vector<16x32xf32>
    %cst_55 = arith.constant dense<0.000000e+00> : vector<16xf32>
    %130 = vector.multi_reduction <add>, %129, %cst_55 [1] : vector<16x32xf32> to vector<16xf32>
    %131 = vector.shape_cast %130 : vector<16xf32> to vector<16x1xf32>
    %cst_56 = arith.constant 3.200000e+01 : f32
    %132 = vector.broadcast %cst_56 : f32 to vector<16x1xf32>
    %133 = arith.divf %131, %132 : vector<16x1xf32>
    %134 = vector.broadcast %126 : vector<16x1xf32> to vector<16x32xf32>
    %135 = arith.subf %122, %134 : vector<16x32xf32>
    %cst_57 = arith.constant 9.99999974E-6 : f32
    %136 = vector.broadcast %cst_57 : f32 to vector<16x1xf32>
    %137 = arith.addf %133, %136 : vector<16x1xf32>
    %138 = math.rsqrt %137 : vector<16x1xf32>
    %139 = vector.broadcast %138 : vector<16x1xf32> to vector<16x32xf32>
    %140 = arith.mulf %135, %139 : vector<16x32xf32>
    %141 = vector.extract_strided_slice %41 {offsets = [2, 0], sizes = [1, 32], strides = [1, 1]} : vector<6x32xf32> to vector<1x32xf32>
    %142 = vector.broadcast %141 : vector<1x32xf32> to vector<16x32xf32>
    %143 = arith.mulf %140, %142 : vector<16x32xf32>
    %144 = vector.extract_strided_slice %41 {offsets = [3, 0], sizes = [1, 32], strides = [1, 1]} : vector<6x32xf32> to vector<1x32xf32>
    %145 = vector.broadcast %144 : vector<1x32xf32> to vector<16x32xf32>
    %146 = arith.addf %143, %145 : vector<16x32xf32>
    %c0_58 = arith.constant 0 : index
    %c0_59 = arith.constant 0 : index
    %147 = vector.load %arg12[%c0_58, %c0_59] : memref<32x64xf32, #tpu.memory_space<vmem>>, vector<32x64xf32>
    %cst_60 = arith.constant dense<0.000000e+00> : vector<16x64xf32>
    %148 = tpu.matmul %146, %147, %cst_60 {dimension_numbers = #tpu.dot_dimension_numbers<[1], [0], [0], [1], [0, 0, 1, 1], [], []>} : vector<16x32xf32>, vector<32x64xf32>, vector<16x64xf32> -> vector<16x64xf32>
    %c0_61 = arith.constant 0 : index
    %c0_62 = arith.constant 0 : index
    %149 = vector.load %arg13[%c0_61, %c0_62] : memref<1x64xf32, #tpu.memory_space<vmem>>, vector<1x64xf32>
    %150 = vector.broadcast %149 : vector<1x64xf32> to vector<16x64xf32>
    %151 = arith.addf %148, %150 : vector<16x64xf32>
    %cst_63 = arith.constant 0.000000e+00 : f32
    %152 = vector.broadcast %cst_63 : f32 to vector<16x64xf32>
    %153 = arith.maximumf %151, %152 : vector<16x64xf32>
    %c0_64 = arith.constant 0 : index
    %c0_65 = arith.constant 0 : index
    %154 = vector.load %arg14[%c0_64, %c0_65] : memref<64x32xf32, #tpu.memory_space<vmem>>, vector<64x32xf32>
    %cst_66 = arith.constant dense<0.000000e+00> : vector<16x32xf32>
    %155 = tpu.matmul %153, %154, %cst_66 {dimension_numbers = #tpu.dot_dimension_numbers<[1], [0], [0], [1], [0, 0, 1, 1], [], []>} : vector<16x64xf32>, vector<64x32xf32>, vector<16x32xf32> -> vector<16x32xf32>
    %156 = vector.extract_strided_slice %41 {offsets = [1, 0], sizes = [1, 32], strides = [1, 1]} : vector<6x32xf32> to vector<1x32xf32>
    %157 = vector.broadcast %156 : vector<1x32xf32> to vector<16x32xf32>
    %158 = arith.addf %155, %157 : vector<16x32xf32>
    %159 = arith.addf %158, %29 : vector<16x32xf32>
    %160 = arith.addf %159, %146 : vector<16x32xf32>
    %cst_67 = arith.constant dense<0.000000e+00> : vector<16xf32>
    %161 = vector.multi_reduction <add>, %160, %cst_67 [1] : vector<16x32xf32> to vector<16xf32>
    %162 = vector.shape_cast %161 : vector<16xf32> to vector<16x1xf32>
    %cst_68 = arith.constant 3.200000e+01 : f32
    %163 = vector.broadcast %cst_68 : f32 to vector<16x1xf32>
    %164 = arith.divf %162, %163 : vector<16x1xf32>
    %165 = vector.broadcast %164 : vector<16x1xf32> to vector<16x32xf32>
    %166 = arith.subf %160, %165 : vector<16x32xf32>
    %167 = arith.mulf %166, %166 : vector<16x32xf32>
    %cst_69 = arith.constant dense<0.000000e+00> : vector<16xf32>
    %168 = vector.multi_reduction <add>, %167, %cst_69 [1] : vector<16x32xf32> to vector<16xf32>
    %169 = vector.shape_cast %168 : vector<16xf32> to vector<16x1xf32>
    %cst_70 = arith.constant 3.200000e+01 : f32
    %170 = vector.broadcast %cst_70 : f32 to vector<16x1xf32>
    %171 = arith.divf %169, %170 : vector<16x1xf32>
    %172 = vector.broadcast %164 : vector<16x1xf32> to vector<16x32xf32>
    %173 = arith.subf %160, %172 : vector<16x32xf32>
    %cst_71 = arith.constant 9.99999974E-6 : f32
    %174 = vector.broadcast %cst_71 : f32 to vector<16x1xf32>
    %175 = arith.addf %171, %174 : vector<16x1xf32>
    %176 = math.rsqrt %175 : vector<16x1xf32>
    %177 = vector.broadcast %176 : vector<16x1xf32> to vector<16x32xf32>
    %178 = arith.mulf %173, %177 : vector<16x32xf32>
    %179 = vector.extract_strided_slice %41 {offsets = [4, 0], sizes = [1, 32], strides = [1, 1]} : vector<6x32xf32> to vector<1x32xf32>
    %180 = vector.broadcast %179 : vector<1x32xf32> to vector<16x32xf32>
    %181 = arith.mulf %178, %180 : vector<16x32xf32>
    %182 = vector.extract_strided_slice %41 {offsets = [5, 0], sizes = [1, 32], strides = [1, 1]} : vector<6x32xf32> to vector<1x32xf32>
    %183 = vector.broadcast %182 : vector<1x32xf32> to vector<16x32xf32>
    %184 = arith.addf %181, %183 : vector<16x32xf32>
    %185 = vector.shape_cast %184 : vector<16x32xf32> to vector<2x8x32xf32>
    %c0_72 = arith.constant 0 : index
    %c0_73 = arith.constant 0 : index
    %c0_74 = arith.constant 0 : index
    %186 = vector.load %arg16[%c0_72, %c0_73, %c0_74] : memref<2x8x32xf32, #tpu.memory_space<vmem>>, vector<2x8x32xf32>
    tpu.vector_store %arg16[%c0_72, %c0_73, %c0_74], %185 {strides = array<i32>} : memref<2x8x32xf32, #tpu.memory_space<vmem>>, vector<2x8x32xf32>,
    return
  }
  func.func @transform_0(%arg0: i32) -> (i32, i32, i32) {
    %c0_i32 = arith.constant 0 : i32
    %c0_i32_0 = arith.constant 0 : i32
    %c0_i32_1 = arith.constant 0 : i32
    return %arg0, %c0_i32, %c0_i32_0 : i32, i32, i32
  }
  func.func @transform_1(%arg0: i32) -> (i32, i32, i32) {
    %c0_i32 = arith.constant 0 : i32
    %c0_i32_0 = arith.constant 0 : i32
    %c0_i32_1 = arith.constant 0 : i32
    return %arg0, %c0_i32, %c0_i32_0 : i32, i32, i32
  }
  func.func @transform_2(%arg0: i32) -> (i32, i32) {
    %c0_i32 = arith.constant 0 : i32
    %c0_i32_0 = arith.constant 0 : i32
    %c0_i32_1 = arith.constant 0 : i32
    return %c0_i32, %c0_i32_0 : i32, i32
  }
  func.func @transform_3(%arg0: i32) -> (i32, i32) {
    %c0_i32 = arith.constant 0 : i32
    %c0_i32_0 = arith.constant 0 : i32
    %c0_i32_1 = arith.constant 0 : i32
    return %c0_i32, %c0_i32_0 : i32, i32
  }
  func.func @transform_4(%arg0: i32) -> (i32, i32) {
    %c0_i32 = arith.constant 0 : i32
    %c0_i32_0 = arith.constant 0 : i32
    %c0_i32_1 = arith.constant 0 : i32
    return %c0_i32, %c0_i32_0 : i32, i32
  }
  func.func @transform_5(%arg0: i32) -> (i32, i32) {
    %c0_i32 = arith.constant 0 : i32
    %c0_i32_0 = arith.constant 0 : i32
    %c0_i32_1 = arith.constant 0 : i32
    return %c0_i32, %c0_i32_0 : i32, i32
  }
  func.func @transform_6(%arg0: i32) -> (i32, i32) {
    %c0_i32 = arith.constant 0 : i32
    %c0_i32_0 = arith.constant 0 : i32
    %c0_i32_1 = arith.constant 0 : i32
    return %c0_i32, %c0_i32_0 : i32, i32
  }
  func.func @transform_7(%arg0: i32) -> (i32, i32) {
    %c0_i32 = arith.constant 0 : i32
    %c0_i32_0 = arith.constant 0 : i32
    %c0_i32_1 = arith.constant 0 : i32
    return %c0_i32, %c0_i32_0 : i32, i32
  }
  func.func @transform_8(%arg0: i32) -> (i32, i32) {
    %c0_i32 = arith.constant 0 : i32
    %c0_i32_0 = arith.constant 0 : i32
    %c0_i32_1 = arith.constant 0 : i32
    return %c0_i32, %c0_i32_0 : i32, i32
  }
  func.func @transform_9(%arg0: i32) -> (i32, i32) {
    %c0_i32 = arith.constant 0 : i32
    %c0_i32_0 = arith.constant 0 : i32
    %c0_i32_1 = arith.constant 0 : i32
    return %c0_i32, %c0_i32_0 : i32, i32
  }
  func.func @transform_10(%arg0: i32) -> (i32, i32) {
    %c0_i32 = arith.constant 0 : i32
    %c0_i32_0 = arith.constant 0 : i32
    %c0_i32_1 = arith.constant 0 : i32
    return %c0_i32, %c0_i32_0 : i32, i32
  }
  func.func @transform_11(%arg0: i32) -> (i32, i32) {
    %c0_i32 = arith.constant 0 : i32
    %c0_i32_0 = arith.constant 0 : i32
    %c0_i32_1 = arith.constant 0 : i32
    return %c0_i32, %c0_i32_0 : i32, i32
  }
  func.func @transform_12(%arg0: i32) -> (i32, i32) {
    %c0_i32 = arith.constant 0 : i32
    %c0_i32_0 = arith.constant 0 : i32
    %c0_i32_1 = arith.constant 0 : i32
    return %c0_i32, %c0_i32_0 : i32, i32
  }
  func.func @transform_13(%arg0: i32) -> (i32, i32) {
    %c0_i32 = arith.constant 0 : i32
    %c0_i32_0 = arith.constant 0 : i32
    %c0_i32_1 = arith.constant 0 : i32
    return %c0_i32, %c0_i32_0 : i32, i32
  }
  func.func @transform_14(%arg0: i32) -> (i32, i32) {
    %c0_i32 = arith.constant 0 : i32
    %c0_i32_0 = arith.constant 0 : i32
    %c0_i32_1 = arith.constant 0 : i32
    return %c0_i32, %c0_i32_0 : i32, i32
  }
  func.func @transform_15(%arg0: i32) -> (i32, i32, i32) {
    %c0_i32 = arith.constant 0 : i32
    %c0_i32_0 = arith.constant 0 : i32
    %c0_i32_1 = arith.constant 0 : i32
    return %arg0, %c0_i32, %c0_i32_0 : i32, i32, i32
  }
}

</mosaic_0001>

<bundles_post_ra>
// kernel: tpu_custom_call.1
= control target key start
LH: loop header
LB: loop body
LE: loop exit
PB: predicated region body
PF: predicated region fallthrough
CT: control target
= control target key end

     0   :  { %20 = vsyncpa [#allocation3], 0  ;;  %s4680_s0 = inlined_call_operand.hbm [shape: f32[2,8,32], index: 0, kind: input, shape index: {}]   ;;  %s4681_s1 = inlined_call_operand.hbm [shape: f32[2,1,64], index: 1, kind: input, shape index: {}]   ;;  %s4682_s2 = inlined_call_operand.vmem [shape: bf16[64,768], index: 2, kind: input, shape index: {}]   ;;  %s4683_s3 = inlined_call_operand.hbm [shape: f32[1,768], index: 3, kind: input, shape index: {}]   ;;  %s4684_s4 = inlined_call_operand.hbm [shape: bf16[768,384], index: 4, kind: input, shape index: {}]   ;;  %s4685_s5 = inlined_call_operand.vmem [shape: f32[1,384], index: 5, kind: input, shape index: {}]   ;;  %s4686_s6 = inlined_call_operand.vmem [shape: bf16[384,32], index: 6, kind: input, shape index: {}]   ;;  %s4687_s7 = inlined_call_operand.hbm [shape: f32[1,32], index: 7, kind: input, shape index: {}]   ;;  %s4688_s8 = inlined_call_operand.vmem [shape: f32[32,96], index: 8, kind: input, shape index: {}]   ;;  %s4689_s9 = inlined_call_operand.hbm [shape: f32[1,96], index: 9, kind: input, shape index: {}]   ;;  %s4690_s10 = inlined_call_operand.vmem [shape: f32[32,32], index: 10, kind: input, shape index: {}]   ;;  %s4691_s11 = inlined_call_operand.vmem [shape: f32[32,64], index: 11, kind: input, shape index: {}]   ;;  %s4692_s12 = inlined_call_operand.hbm [shape: f32[1,64], index: 12, kind: input, shape index: {}]   ;;  %s4693_s13 = inlined_call_operand.vmem [shape: f32[64,32], index: 13, kind: input, shape index: {}]   ;;  %s4694_s14 = inlined_call_operand.vmem [shape: f32[6,32], index: 14, kind: input, shape index: {}]   ;;  %s4695_s15 = inlined_call_operand.hbm [shape: f32[2,8,32], index: 15, kind: output, shape index: {}]  }
   0x1   :  { %21 = vsyncpa [#allocation6], 0 }
   0x2   :  { %22 = vsyncpa [#allocation9], 0 }
   0x3   :  { %23 = vsyncpa [#allocation12], 0  ;;  %s42_s20 = sshll.u32 %s4681_s1, 4  ;;  %s43_s20 = int_to_ptr.hbm [resolvable:$true] %s42_s20 }
   0x4   :  { %24 = vsyncpa [#allocation4], 0  ;;  %s4053_s21 = smov [#allocation5]   ;;  %s68_s25 = sshll.u32 %s4684_s4, 4  ;;  %s69_s25 = int_to_ptr.hbm [resolvable:$true] %s68_s25 }
   0x5   :  { %s44_s22 = sshll.u32 %s4053_s21, 4  ;;  %s4054_s26 = smov 16   ;;  %s45_s22 = int_to_ptr.vmem [resolvable:$true] %s44_s22 }
   0x6   :  { %s4055_s27 = smov 1   ;;  %s4056_s28 = smov [#allocation8]  }
   0x7   :  { %50 = dma.hbm_to_vmem [thread:$0]  %s43_s20, 32, %s45_s22, [#allocation6], %s4054_s26, %s4054_s26, %s4055_s27  }
   0x8   :  { %s70_s29 = sshll.u32 %s4056_s28, 4  ;;  %s4057_s30 = smov 192   ;;  %s71_s29 = int_to_ptr.vmem [resolvable:$true] %s70_s29 }
   0x9   :  { %s4058_s16 = smov 12   ;;  %s99_s18 = sshll.u32 %s4689_s9, 4  ;;  %s100_s18 = int_to_ptr.hbm [resolvable:$true] %s99_s18 }
   0xa   :  { %76 = dma.hbm_to_vmem [thread:$0]  %s69_s25, 18432, %s71_s29, [#allocation9], %s4057_s30, %s4057_s30, %s4058_s16  }
   0xb   :  { %s4059_s19 = smov [#allocation11]   ;;  %s29_s24 = sshll.u32 %s4680_s0, 4  ;;  %s30_s24 = int_to_ptr.hbm [resolvable:$true] %s29_s24 }
   0xc   :  { %s101_s21 = sshll.u32 %s4059_s19, 4  ;;  %s4060_s20 = smov [#allocation2]   ;;  %s102_s21 = int_to_ptr.vmem [resolvable:$true] %s101_s21 }
   0xd   :  { %104 = dma.hbm_to_vmem [thread:$0]  %s100_s18, 16, %s102_s21, [#allocation12]  }
   0xe   :  { %s31_s22 = sshll.u32 %s4060_s20, 4  ;;  %s4061_s26 = smov 128   ;;  %s32_s22 = int_to_ptr.vmem [resolvable:$true] %s31_s22 }
   0xf   :  { %s4062_s27 = smov 8   ;;  %s58_s28 = sshll.u32 %s4683_s3, 4  ;;  %s59_s28 = int_to_ptr.hbm [resolvable:$true] %s58_s28 }
  0x10   :  { %37 = dma.hbm_to_vmem [thread:$0]  %s30_s24, 256, %s32_s22, [#allocation3], %s4061_s26, %s4061_s26, %s4062_s27  }
  0x11   :  { %s4063_s29 = smov [#allocation7]   ;;  %s86_s1 = sshll.u32 %s4687_s7, 4  ;;  %s87_s1 = int_to_ptr.hbm [resolvable:$true] %s86_s1 }
  0x12   :  { %s60_s30 = sshll.u32 %s4063_s29, 4  ;;  %s4064_s17 = smov [#allocation10]   ;;  %s61_s30 = int_to_ptr.vmem [resolvable:$true] %s60_s30 }
  0x13   :  { %63 = dma.hbm_to_vmem [thread:$0]  %s59_s28, 96, %s61_s30, [#allocation6]  }
  0x14   :  { %s88_s18 = sshll.u32 %s4064_s17, 4  ;;  %s114_s23 = sshll.u32 %s4692_s12, 4  ;;  %s89_s18 = int_to_ptr.vmem [resolvable:$true] %s88_s18  ;;  %s115_s23 = int_to_ptr.hbm [resolvable:$true] %s114_s23 }
  0x15   :  { %91 = dma.hbm_to_vmem [thread:$0]  %s87_s1, 16, %s89_s18, [#allocation9]  }
  0x16   :  { %s4065_s3 = smov [#allocation13]  }
  0x17   :  { %s116_s4 = sshll.u32 %s4065_s3, 4  ;;  %s117_s4 = int_to_ptr.vmem [resolvable:$true] %s116_s4 }
  0x18   :  { %119 = dma.hbm_to_vmem [thread:$0]  %s115_s23, 16, %s117_s4, [#allocation12]  }
  0x19   :  { %4043 = dma.done.wait [#allocation3], 256  }
  0x1a   :  { %4044 = vsyncadd [#allocation3], 4294967040 }
  0x1b   :  { %4045 = dma.done.wait [#allocation6], 128  }
  0x1c   :  { %4046 = vsyncadd [#allocation6], 4294967168 }
  0x1d   :  { %4047 = dma.done.wait [#allocation9], 18448  }
  0x1e   :  { %4048 = vsyncadd [#allocation9], 4294948848 }
  0x1f   :  { %4049 = dma.done.wait [#allocation12], 32  }
  0x20   :  { %4050 = vsyncadd [#allocation12], 4294967264  ;;  %v2845_v0 = vld [vmem:[%s4682_s2 + $0x90] sm:$0xf]  ;;  %v3604_v1 = vld [vmem:[%s4682_s2 + $0xa4] sm:$0xf0] }
  0x21   :  { %v3601_v2 = vld [vmem:[%s4682_s2 + $0x94] sm:$0xf]  ;;  %v2846_v3 = vor.u32 %v3604_v1, %v2845_v0  ;;  %v2847_v4 = vld [vmem:[%s4682_s2 + $0xa8] sm:$0xf0]  ;;  %v2853_v5 = vld [vmem:[%s4682_s2 + $0x98] sm:$0xf] }
  0x22   :  { %v3605_v6 = vld [vmem:[%s4682_s2 + $0xac] sm:$0xf0]  ;;  %v2850_v7 = vor.u32 %v3601_v2, %v2847_v4  ;;  %v3602_v9 = vld [vmem:[%s4682_s2 + $0x9c] sm:$0xf]  ;;  %v2855_v10 = vld [vmem:[%s4682_s2 + $0xb0] sm:$0xf0] }
  0x23   :  { %v2854_v8 = vor.u32 %v3605_v6, %v2853_v5  ;;  %v2821_v11 = vld [vmem:[%s4682_s2 + $0x60] sm:$0xf]  ;;  %333 = vmatpush.bf16.msra.mxu0 %v2846_v3  ;;  %v2858_v12 = vor.u32 %v3602_v9, %v2855_v10  ;;  %v3598_v13 = vld [vmem:[%s4682_s2 + $0x74] sm:$0xf0]  ;;  %v3595_v14 = vld [vmem:[%s4682_s2 + $0x64] sm:$0xf] }
  0x24   :  { %v2823_v15 = vld [vmem:[%s4682_s2 + $0x78] sm:$0xf0]  ;;  %346 = vmatpush.bf16.msra.mxu1 %v2850_v7  ;;  %v2822_v16 = vor.u32 %v3598_v13, %v2821_v11  ;;  %v2829_v18 = vld [vmem:[%s4682_s2 + $0x68] sm:$0xf]  ;;  %v3599_v19 = vld [vmem:[%s4682_s2 + $0x7c] sm:$0xf0] }
  0x25   :  { %359 = vmatpush.bf16.msra.mxu2 %v2854_v8  ;;  %v2826_v17 = vor.u32 %v3595_v14, %v2823_v15  ;;  %v3596_v20 = vld [vmem:[%s4682_s2 + $0x6c] sm:$0xf]  ;;  %372 = vmatpush.bf16.msra.mxu3 %v2858_v12  ;;  %v2830_v21 = vor.u32 %v3599_v19, %v2829_v18  ;;  %v2831_v22 = vld [vmem:[%s4682_s2 + $0x80] sm:$0xf0]  ;;  %v2797_v23 = vld [vmem:[%s4682_s2 + $0x30] sm:$0xf] }
  0x26   :  { %v3592_v24 = vld [vmem:[%s4682_s2 + $0x44] sm:$0xf0]  ;;  %v2834_v25 = vor.u32 %v3596_v20, %v2831_v22  ;;  %v3589_v26 = vld [vmem:[%s4682_s2 + $0x34] sm:$0xf]  ;;  %v2799_v27 = vld [vmem:[%s4682_s2 + $0x48] sm:$0xf0] }
  0x27   :  { %v2805_v28 = vld [vmem:[%s4682_s2 + $0x38] sm:$0xf]  ;;  %334 = vmatpush.bf16.msra.mxu0 %v2822_v16  ;;  %v2798_v29 = vor.u32 %v3592_v24, %v2797_v23  ;;  %v3593_v30 = vld [vmem:[%s4682_s2 + $0x4c] sm:$0xf0]  ;;  %v3590_v31 = vld [vmem:[%s4682_s2 + $0x3c] sm:$0xf]  ;;  %v2802_v33 = vor.u32 %v3589_v26, %v2799_v27 }
  0x28   :  { %v2807_v32 = vld [vmem:[%s4682_s2 + $0x50] sm:$0xf0]  ;;  %347 = vmatpush.bf16.msra.mxu1 %v2826_v17  ;;  %v2806_v34 = vor.u32 %v3593_v30, %v2805_v28  ;;  %v2773_v35 = vld [vmem:[%s4682_s2] sm:$0xf]  ;;  %v3586_v36 = vld [vmem:[%s4682_s2 + $0x14] sm:$0xf0] }
  0x29   :  { %360 = vmatpush.bf16.msra.mxu2 %v2830_v21  ;;  %v3583_v37 = vld [vmem:[%s4682_s2 + $0x4] sm:$0xf]  ;;  %373 = vmatpush.bf16.msra.mxu3 %v2834_v25  ;;  %v2810_v38 = vor.u32 %v3590_v31, %v2807_v32  ;;  %v2775_v39 = vld [vmem:[%s4682_s2 + $0x18] sm:$0xf0]  ;;  %v2781_v40 = vld [vmem:[%s4682_s2 + $0x8] sm:$0xf]  ;;  %v2774_v45 = vor.u32 %v3586_v36, %v2773_v35 }
  0x2a   :  { %v3587_v41 = vld [vmem:[%s4682_s2 + $0x1c] sm:$0xf0]  ;;  %v3584_v42 = vld [vmem:[%s4682_s2 + $0xc] sm:$0xf]  ;;  %v2783_v43 = vld [vmem:[%s4682_s2 + $0x20] sm:$0xf0]  ;;  %v2778_v50 = vor.u32 %v3583_v37, %v2775_v39 }
  0x2b   :  { %v155_v44 = vld [vmem:[#allocation5] sm:$0x1]  ;;  %335 = vmatpush.bf16.msra.mxu0 %v2798_v29  ;;  %v156_v46 = vld [vmem:[#allocation5 + $0x1] sm:$0x1]  ;;  %v2861_v48 = vld [vmem:[%s4682_s2 + $0xa0] sm:$0xf]  ;;  %v2782_v51 = vor.u32 %v3587_v41, %v2781_v40  ;;  %v2786_v55 = vor.u32 %v3584_v42, %v2783_v43 }
  0x2c   :  { %v157_v47 = vpack.c.bf16 %v155_v44, %v155_v44  ;;  %v3606_v49 = vld [vmem:[%s4682_s2 + $0xb4] sm:$0xf0]  ;;  %348 = vmatpush.bf16.msra.mxu1 %v2802_v33  ;;  %v158_v52 = vpack.c.bf16 %v156_v46, %v156_v46  ;;  %v3603_v53 = vld [vmem:[%s4682_s2 + $0xa4] sm:$0xf]  ;;  %v2863_v54 = vld [vmem:[%s4682_s2 + $0xb8] sm:$0xf0] }
  0x2d   :  { %361 = vmatpush.bf16.msra.mxu2 %v2806_v34  ;;  %374 = vmatpush.bf16.msra.mxu3 %v2810_v38  ;;  %v2862_v56 = vor.u32 %v3606_v49, %v2861_v48  ;;  %v2866_v59 = vor.u32 %v3603_v53, %v2863_v54  ;;  %vm202_vm0 = vcmask 1041409   ;;  %v2837_v60 = vld [vmem:[%s4682_s2 + $0x70] sm:$0xf]  ;;  %v3600_v61 = vld [vmem:[%s4682_s2 + $0x84] sm:$0xf0]  ;;  %vm325_vm1 = vcmask 523264  }
  0x2e   :  { %v199_v57 = vunpack.c.l.b16 %v157_v47  ;;  %v200_v58 = vunpack.c.l.b16 %v158_v52  ;;  %v3597_v63 = vld [vmem:[%s4682_s2 + $0x74] sm:$0xf]  ;;  %v2839_v0 = vld [vmem:[%s4682_s2 + $0x88] sm:$0xf0]  ;;  %v2959_v1 = vld [vmem:[#allocation8 + $0xa8] sm:$0xf]  ;;  %v2838_v10 = vor.u32 %v3600_v61, %v2837_v60 }
  0x2f   :  { %336 = vmatpush.bf16.msra.mxu0 %v2774_v45  ;;  %v3629_v2 = vld [vmem:[#allocation8 + $0xb0] sm:$0xf0]  ;;  %v3055_v3 = vld [vmem:[#allocation8 + $0x168] sm:$0xf]  ;;  %v2947_v7 = vld [vmem:[#allocation8 + $0x90] sm:$0xf]  ;;  %v2842_v11 = vor.u32 %v3597_v63, %v2839_v0 }
  0x30   :  { %349 = vmatpush.bf16.msra.mxu1 %v2778_v50  ;;  %v201_v62 = vrot.slane %v200_v58, 7  ;;  %v2960_v5 = vor.u32 %v3629_v2, %v2959_v1  ;;  %v3653_v6 = vld [vmem:[#allocation8 + $0x170] sm:$0xf0]  ;;  %v3626_v8 = vld [vmem:[#allocation8 + $0x98] sm:$0xf0]  ;;  %vm1876_vm2 = vcmask 261120  }
  0x31   :  { %362 = vmatpush.bf16.msra.mxu2 %v2782_v51  ;;  %375 = vmatpush.bf16.msra.mxu3 %v2786_v55  ;;  %v2813_v12 = vld [vmem:[%s4682_s2 + $0x40] sm:$0xf]  ;;  %v3594_v13 = vld [vmem:[%s4682_s2 + $0x54] sm:$0xf0]  ;;  %v3591_v14 = vld [vmem:[%s4682_s2 + $0x44] sm:$0xf]  ;;  %v3056_v16 = vor.u32 %v3653_v6, %v3055_v3  ;;  %v2948_v17 = vor.u32 %v3626_v8, %v2947_v7 }
  0x32   :  { %v203_v4 = vsel %vm202_vm0, %v201_v62, %v199_v57  ;;  %v2815_v15 = vld [vmem:[%s4682_s2 + $0x58] sm:$0xf0]  ;;  %v3043_v18 = vld [vmem:[#allocation8 + $0x150] sm:$0xf]  ;;  %v3650_v19 = vld [vmem:[#allocation8 + $0x158] sm:$0xf0]  ;;  %v2814_v22 = vor.u32 %v3594_v13, %v2813_v12 }
  0x33   :  { %385 = vmatpush.bf16.msrb.mxu0 %v2862_v56  ;;  %v4303_v9 = vpack.c.b16 %v203_v4, %v203_v4  ;;  %v2935_v20 = vld [vmem:[#allocation8 + $0x78] sm:$0xf]  ;;  %v3623_v21 = vld [vmem:[#allocation8 + $0x80] sm:$0xf0]  ;;  %v2818_v23 = vor.u32 %v3591_v14, %v2815_v15  ;;  %v3588_v25 = vld [vmem:[%s4682_s2 + $0x24] sm:$0xf0]  ;;  %v3044_v28 = vor.u32 %v3650_v19, %v3043_v18 }
  0x34   :  { %398 = vmatpush.bf16.msrb.mxu1 %v2866_v59  ;;  %v2789_v24 = vld [vmem:[%s4682_s2 + $0x10] sm:$0xf]  ;;  %v3585_v26 = vld [vmem:[%s4682_s2 + $0x14] sm:$0xf]  ;;  %v2791_v27 = vld [vmem:[%s4682_s2 + $0x28] sm:$0xf0]  ;;  %v2936_v31 = vor.u32 %v3623_v21, %v2935_v20 }
  0x35   :  { %1387 = vmatpush.bf16.msrb.mxu2 %v2960_v5  ;;  %2867 = vmatmul.msk.bf16.vlgmr.msra.gmra.mxu0 %vm325_vm1, %v4303_v9  ;;  %v3247_v29 = vld [vmem:[#allocation8 + $0x2e8] sm:$0xf]  ;;  %v3701_v30 = vld [vmem:[#allocation8 + $0x2f0] sm:$0xf0]  ;;  %v3031_v32 = vld [vmem:[#allocation8 + $0x138] sm:$0xf]  ;;  %v2790_v38 = vor.u32 %v3588_v25, %v2789_v24  ;;  %v2794_v39 = vor.u32 %v3585_v26, %v2791_v27 }
  0x36   :  { %2868 = vmatmul.msk.bf16.vlgmr.msra.gmra.mxu1 %vm325_vm1, %v4303_v9  ;;  %2869 = vmatmul.msk.bf16.vlgmr.msra.gmra.mxu2 %vm325_vm1, %v4303_v9  ;;  %v3647_v33 = vld [vmem:[#allocation8 + $0x140] sm:$0xf0]  ;;  %v3151_v34 = vld [vmem:[#allocation8 + $0x228] sm:$0xf]  ;;  %v3677_v35 = vld [vmem:[#allocation8 + $0x230] sm:$0xf0]  ;;  %v3248_v40 = vor.u32 %v3701_v30, %v3247_v29 }
  0x37   :  { %2870 = vmatmul.msk.bf16.vlgmr.msra.gmra.mxu3 %vm325_vm1, %v4303_v9  ;;  %386 = vmatpush.bf16.msrb.mxu0 %v2838_v10  ;;  %v2923_v36 = vld [vmem:[#allocation8 + $0x60] sm:$0xf]  ;;  %v3620_v37 = vld [vmem:[#allocation8 + $0x68] sm:$0xf0]  ;;  %v3032_v41 = vor.u32 %v3647_v33, %v3031_v32  ;;  %v3235_v42 = vld [vmem:[#allocation8 + $0x2d0] sm:$0xf]  ;;  %v3152_v43 = vor.u32 %v3677_v35, %v3151_v34 }
  0x38   :  { %399 = vmatpush.bf16.msrb.mxu1 %v2842_v11  ;;  %1400 = vmatpush.bf16.msrb.mxu3 %v3056_v16  ;;  %v3698_v44 = vld [vmem:[#allocation8 + $0x2d8] sm:$0xf0]  ;;  %v2924_v45 = vor.u32 %v3620_v37, %v2923_v36  ;;  %v3019_v46 = vld [vmem:[#allocation8 + $0x120] sm:$0xf]  ;;  %v3644_v47 = vld [vmem:[#allocation8 + $0x128] sm:$0xf0] }
  0x39   :  { %1388 = vmatpush.bf16.msrb.mxu2 %v2948_v17  ;;  %v3139_v48 = vld [vmem:[#allocation8 + $0x210] sm:$0xf]  ;;  %v3674_v49 = vld [vmem:[#allocation8 + $0x218] sm:$0xf0]  ;;  %v2911_v50 = vld [vmem:[#allocation8 + $0x48] sm:$0xf]  ;;  %v3236_v52 = vor.u32 %v3698_v44, %v3235_v42  ;;  %v3020_v53 = vor.u32 %v3644_v47, %v3019_v46 }
  0x3a   :  { %v3617_v51 = vld [vmem:[#allocation8 + $0x50] sm:$0xf0]  ;;  %v3223_v54 = vld [vmem:[#allocation8 + $0x2b8] sm:$0xf]  ;;  %v3695_v55 = vld [vmem:[#allocation8 + $0x2c0] sm:$0xf0]  ;;  %v3140_v58 = vor.u32 %v3674_v49, %v3139_v48 }
  0x3b   :  { %387 = vmatpush.bf16.msrb.mxu0 %v2814_v22  ;;  %v3007_v56 = vld [vmem:[#allocation8 + $0x108] sm:$0xf]  ;;  %v3641_v57 = vld [vmem:[#allocation8 + $0x110] sm:$0xf0]  ;;  %v2912_v59 = vor.u32 %v3617_v51, %v2911_v50  ;;  %v3127_v60 = vld [vmem:[#allocation8 + $0x1f8] sm:$0xf]  ;;  %v3224_v0 = vor.u32 %v3695_v55, %v3223_v54 }
  0x3c   :  { %400 = vmatpush.bf16.msrb.mxu1 %v2818_v23  ;;  %1401 = vmatpush.bf16.msrb.mxu3 %v3044_v28  ;;  %v3671_v61 = vld [vmem:[#allocation8 + $0x200] sm:$0xf0]  ;;  %v2899_v62 = vld [vmem:[#allocation8 + $0x30] sm:$0xf]  ;;  %v3614_v63 = vld [vmem:[#allocation8 + $0x38] sm:$0xf0]  ;;  %v3008_v1 = vor.u32 %v3641_v57, %v3007_v56 }
  0x3d   :  { %1389 = vmatpush.bf16.msrb.mxu2 %v2936_v31  ;;  %v3211_v2 = vld [vmem:[#allocation8 + $0x2a0] sm:$0xf]  ;;  %v3692_v3 = vld [vmem:[#allocation8 + $0x2a8] sm:$0xf0]  ;;  %v2995_v4 = vld [vmem:[#allocation8 + $0xf0] sm:$0xf]  ;;  %v3128_v6 = vor.u32 %v3671_v61, %v3127_v60  ;;  %v2900_v7 = vor.u32 %v3614_v63, %v2899_v62 }
  0x3e   :  { %v3638_v5 = vld [vmem:[#allocation8 + $0xf8] sm:$0xf0]  ;;  %v3115_v8 = vld [vmem:[#allocation8 + $0x1e0] sm:$0xf]  ;;  %v3668_v10 = vld [vmem:[#allocation8 + $0x1e8] sm:$0xf0]  ;;  %v3212_v13 = vor.u32 %v3692_v3, %v3211_v2 }
  0x3f   :  { %388 = vmatpush.bf16.msrb.mxu0 %v2790_v38  ;;  %v2887_v11 = vld [vmem:[#allocation8 + $0x18] sm:$0xf]  ;;  %v3611_v12 = vld [vmem:[#allocation8 + $0x20] sm:$0xf0]  ;;  %v2996_v14 = vor.u32 %v3638_v5, %v2995_v4  ;;  %v3199_v15 = vld [vmem:[#allocation8 + $0x288] sm:$0xf] }
  0x40   :  { %401 = vmatpush.bf16.msrb.mxu1 %v2794_v39  ;;  %1402 = vmatpush.bf16.msrb.mxu3 %v3032_v41  ;;  %v3689_v16 = vld [vmem:[#allocation8 + $0x290] sm:$0xf0]  ;;  %v2983_v17 = vld [vmem:[#allocation8 + $0xd8] sm:$0xf]  ;;  %v3635_v18 = vld [vmem:[#allocation8 + $0xe0] sm:$0xf0]  ;;  %v2888_v19 = vor.u32 %v3611_v12, %v2887_v11 }
  0x41   :  { %1390 = vmatpush.bf16.msrb.mxu2 %v2924_v45  ;;  %v3103_v20 = vld [vmem:[#allocation8 + $0x1c8] sm:$0xf]  ;;  %v3665_v21 = vld [vmem:[#allocation8 + $0x1d0] sm:$0xf0]  ;;  %v2875_v22 = vld [vmem:[#allocation8] sm:$0xf]  ;;  %v3200_v24 = vor.u32 %v3689_v16, %v3199_v15  ;;  %v2984_v25 = vor.u32 %v3635_v18, %v2983_v17 }
  0x42   :  { %v3608_v23 = vld [vmem:[#allocation8 + $0x8] sm:$0xf0]  ;;  %v3187_v26 = vld [vmem:[#allocation8 + $0x270] sm:$0xf]  ;;  %v3343_v27 = vld [vmem:[#allocation8 + $0x3a8] sm:$0xf]  ;;  %v3104_v32 = vor.u32 %v3665_v21, %v3103_v20 }
  0x43   :  { %1413 = vmatpush.bf16.msra.mxu0 %v3152_v43  ;;  %v3725_v28 = vld [vmem:[#allocation8 + $0x3b0] sm:$0xf0]  ;;  %v3686_v29 = vld [vmem:[#allocation8 + $0x278] sm:$0xf0]  ;;  %v2971_v30 = vld [vmem:[#allocation8 + $0xc0] sm:$0xf]  ;;  %v2876_v33 = vor.u32 %v3608_v23, %v2875_v22 }
  0x44   :  { %1426 = vmatpush.bf16.msra.mxu1 %v3248_v40  ;;  %1403 = vmatpush.bf16.msrb.mxu3 %v3020_v53  ;;  %v3632_v31 = vld [vmem:[#allocation8 + $0xc8] sm:$0xf0]  ;;  %v3439_v34 = vld [vmem:[#allocation8 + $0x468] sm:$0xf]  ;;  %v3749_v35 = vld [vmem:[#allocation8 + $0x470] sm:$0xf0]  ;;  %v3344_v36 = vor.u32 %v3725_v28, %v3343_v27  ;;  %v3188_v39 = vor.u32 %v3686_v29, %v3187_v26 }
  0x45   :  { %2871 = vmatmul.msk.bf16.vlgmr.msrb.gmra.mxu0 %vm325_vm1, %v4303_v9  ;;  %1391 = vmatpush.bf16.msrb.mxu2 %v2912_v59  ;;  %v3091_v37 = vld [vmem:[#allocation8 + $0x1b0] sm:$0xf]  ;;  %v3662_v38 = vld [vmem:[#allocation8 + $0x1b8] sm:$0xf0]  ;;  %v2972_v40 = vor.u32 %v3632_v31, %v2971_v30  ;;  %v3440_v43 = vor.u32 %v3749_v35, %v3439_v34  ;;  %v3175_v44 = vld [vmem:[#allocation8 + $0x258] sm:$0xf] }
  0x46   :  { %2872 = vmatmul.msk.bf16.vlgmr.msrb.gmra.mxu1 %vm325_vm1, %v4303_v9  ;;  %v3116_v9 = vor.u32 %v3668_v10, %v3115_v8  ;;  %v3331_v41 = vld [vmem:[#allocation8 + $0x390] sm:$0xf]  ;;  %v3722_v42 = vld [vmem:[#allocation8 + $0x398] sm:$0xf0]  ;;  %v3683_v45 = vld [vmem:[#allocation8 + $0x260] sm:$0xf0]  ;;  %v3092_v46 = vor.u32 %v3662_v38, %v3091_v37 }
  0x47   :  { %1414 = vmatpush.bf16.msra.mxu0 %v3140_v58  ;;  %v3427_v47 = vld [vmem:[#allocation8 + $0x450] sm:$0xf]  ;;  %v3746_v48 = vld [vmem:[#allocation8 + $0x458] sm:$0xf0]  ;;  %v3079_v49 = vld [vmem:[#allocation8 + $0x198] sm:$0xf]  ;;  %v3332_v50 = vor.u32 %v3722_v42, %v3331_v41 }
  0x48   :  { %1427 = vmatpush.bf16.msra.mxu1 %v3236_v52  ;;  %1404 = vmatpush.bf16.msrb.mxu3 %v3008_v1  ;;  %v3659_v51 = vld [vmem:[#allocation8 + $0x1a0] sm:$0xf0]  ;;  %v3176_v52 = vor.u32 %v3683_v45, %v3175_v44  ;;  %v3319_v53 = vld [vmem:[#allocation8 + $0x378] sm:$0xf]  ;;  %v3428_v55 = vor.u32 %v3746_v48, %v3427_v47  ;;  %v3163_v56 = vld [vmem:[#allocation8 + $0x240] sm:$0xf] }
  0x49   :  { %1392 = vmatpush.bf16.msrb.mxu2 %v2900_v7  ;;  %v3719_v54 = vld [vmem:[#allocation8 + $0x380] sm:$0xf0]  ;;  %v3680_v57 = vld [vmem:[#allocation8 + $0x248] sm:$0xf0]  ;;  %v3080_v59 = vor.u32 %v3659_v51, %v3079_v49  ;;  %v3057_v60 = vld [vmem:[#allocation8 + $0x174] sm:$0xf0] }
  0x4a   :  { %v3652_v58 = vld [vmem:[#allocation8 + $0x16c] sm:$0xf]  ;;  %v3415_v61 = vld [vmem:[#allocation8 + $0x438] sm:$0xf]  ;;  %v3743_v62 = vld [vmem:[#allocation8 + $0x440] sm:$0xf0]  ;;  %v3320_v63 = vor.u32 %v3719_v54, %v3319_v53  ;;  %v3164_v3 = vor.u32 %v3680_v57, %v3163_v56 }
  0x4b   :  { %1415 = vmatpush.bf16.msra.mxu0 %v3128_v6  ;;  %v3656_v1 = vld [vmem:[#allocation8 + $0x188] sm:$0xf0]  ;;  %v2961_v4 = vld [vmem:[#allocation8 + $0xb4] sm:$0xf0]  ;;  %v3307_v5 = vld [vmem:[#allocation8 + $0x360] sm:$0xf]  ;;  %v3060_v7 = vor.u32 %v3652_v58, %v3057_v60  ;;  %v3416_v8 = vor.u32 %v3743_v62, %v3415_v61 }
  0x4c   :  { %1428 = vmatpush.bf16.msra.mxu1 %v3224_v0  ;;  %1405 = vmatpush.bf16.msrb.mxu3 %v2996_v14  ;;  %v3067_v0 = vld [vmem:[#allocation8 + $0x180] sm:$0xf]  ;;  %v3628_v2 = vld [vmem:[#allocation8 + $0xac] sm:$0xf]  ;;  %v3649_v10 = vld [vmem:[#allocation8 + $0x154] sm:$0xf] }
  0x4d   :  { %1393 = vmatpush.bf16.msrb.mxu2 %v2888_v19  ;;  %v3716_v6 = vld [vmem:[#allocation8 + $0x368] sm:$0xf0]  ;;  %v3068_v11 = vor.u32 %v3656_v1, %v3067_v0  ;;  %v3045_v12 = vld [vmem:[#allocation8 + $0x15c] sm:$0xf0]  ;;  %v2964_v15 = vor.u32 %v3628_v2, %v2961_v4  ;;  %v3625_v17 = vld [vmem:[#allocation8 + $0x94] sm:$0xf] }
  0x4e   :  { %v3740_v14 = vld [vmem:[#allocation8 + $0x428] sm:$0xf0]  ;;  %v3308_v16 = vor.u32 %v3716_v6, %v3307_v5  ;;  %v2949_v18 = vld [vmem:[#allocation8 + $0x9c] sm:$0xf0]  ;;  %v3713_v19 = vld [vmem:[#allocation8 + $0x350] sm:$0xf0]  ;;  %v3048_v20 = vor.u32 %v3649_v10, %v3045_v12 }
  0x4f   :  { %1416 = vmatpush.bf16.msra.mxu0 %v3116_v9  ;;  %v3295_v9 = vld [vmem:[#allocation8 + $0x348] sm:$0xf]  ;;  %v3646_v22 = vld [vmem:[#allocation8 + $0x13c] sm:$0xf]  ;;  %v2952_v26 = vor.u32 %v3625_v17, %v2949_v18  ;;  %v3283_v30 = vld [vmem:[#allocation8 + $0x330] sm:$0xf] }
  0x50   :  { %1429 = vmatpush.bf16.msra.mxu1 %v3212_v13  ;;  %1406 = vmatpush.bf16.msrb.mxu3 %v2984_v25  ;;  %v3403_v13 = vld [vmem:[#allocation8 + $0x420] sm:$0xf]  ;;  %v3033_v23 = vld [vmem:[#allocation8 + $0x144] sm:$0xf0]  ;;  %v3737_v25 = vld [vmem:[#allocation8 + $0x410] sm:$0xf0]  ;;  %v3296_v27 = vor.u32 %v3713_v19, %v3295_v9 }
  0x51   :  { %1394 = vmatpush.bf16.msrb.mxu2 %v2876_v33  ;;  %v3404_v21 = vor.u32 %v3740_v14, %v3403_v13  ;;  %v3622_v28 = vld [vmem:[#allocation8 + $0x7c] sm:$0xf]  ;;  %v2937_v29 = vld [vmem:[#allocation8 + $0x84] sm:$0xf0]  ;;  %v3643_v34 = vld [vmem:[#allocation8 + $0x124] sm:$0xf] }
  0x52   :  { %v3710_v31 = vld [vmem:[#allocation8 + $0x338] sm:$0xf0]  ;;  %v3021_v35 = vld [vmem:[#allocation8 + $0x12c] sm:$0xf0]  ;;  %v2940_v38 = vor.u32 %v3622_v28, %v2937_v29  ;;  %v3619_v42 = vld [vmem:[#allocation8 + $0x64] sm:$0xf] }
  0x53   :  { %1417 = vmatpush.bf16.msra.mxu0 %v3104_v32  ;;  %v3036_v32 = vor.u32 %v3646_v22, %v3033_v23  ;;  %v3734_v37 = vld [vmem:[#allocation8 + $0x3f8] sm:$0xf0]  ;;  %v3640_v44 = vld [vmem:[#allocation8 + $0x10c] sm:$0xf]  ;;  %v3271_v48 = vld [vmem:[#allocation8 + $0x318] sm:$0xf] }
  0x54   :  { %1430 = vmatpush.bf16.msra.mxu1 %v3200_v24  ;;  %1407 = vmatpush.bf16.msrb.mxu3 %v2972_v40  ;;  %v3391_v24 = vld [vmem:[#allocation8 + $0x408] sm:$0xf]  ;;  %v3024_v40 = vor.u32 %v3643_v34, %v3021_v35  ;;  %v3707_v49 = vld [vmem:[#allocation8 + $0x320] sm:$0xf0]  ;;  %v3367_v51 = vld [vmem:[#allocation8 + $0x3d8] sm:$0xf] }
  0x55   :  { %1439 = vmatpush.bf16.msra.mxu2 %v3344_v36  ;;  %v3392_v33 = vor.u32 %v3737_v25, %v3391_v24  ;;  %v3379_v36 = vld [vmem:[#allocation8 + $0x3f0] sm:$0xf]  ;;  %v3616_v54 = vld [vmem:[#allocation8 + $0x4c] sm:$0xf]  ;;  %v3637_v56 = vld [vmem:[#allocation8 + $0xf4] sm:$0xf] }
  0x56   :  { %v3380_v41 = vor.u32 %v3734_v37, %v3379_v36  ;;  %v2997_v58 = vld [vmem:[#allocation8 + $0xfc] sm:$0xf0]  ;;  %v3704_v61 = vld [vmem:[#allocation8 + $0x308] sm:$0xf0]  ;;  %v3613_v2 = vld [vmem:[#allocation8 + $0x34] sm:$0xf] }
  0x57   :  { %1418 = vmatpush.bf16.msra.mxu0 %v3092_v46  ;;  %v3009_v46 = vld [vmem:[#allocation8 + $0x114] sm:$0xf0]  ;;  %v3259_v60 = vld [vmem:[#allocation8 + $0x300] sm:$0xf]  ;;  %v3728_v0 = vld [vmem:[#allocation8 + $0x3c8] sm:$0xf0] }
  0x58   :  { %1431 = vmatpush.bf16.msra.mxu1 %v3188_v39  ;;  %1452 = vmatpush.bf16.msra.mxu3 %v3440_v43  ;;  %v3284_v39 = vor.u32 %v3710_v31, %v3283_v30  ;;  %v2925_v43 = vld [vmem:[#allocation8 + $0x6c] sm:$0xf0]  ;;  %v3012_v47 = vor.u32 %v3640_v44, %v3009_v46  ;;  %v3355_v62 = vld [vmem:[#allocation8 + $0x3c0] sm:$0xf]  ;;  %v3634_v5 = vld [vmem:[#allocation8 + $0xdc] sm:$0xf] }
  0x59   :  { %1440 = vmatpush.bf16.msra.mxu2 %v3332_v50  ;;  %v2928_v45 = vor.u32 %v3619_v42, %v2925_v43  ;;  %v3272_v50 = vor.u32 %v3707_v49, %v3271_v48  ;;  %v3356_v1 = vor.u32 %v3728_v0, %v3355_v62  ;;  %v2985_v6 = vld [vmem:[#allocation8 + $0xe4] sm:$0xf0]  ;;  %v3631_v12 = vld [vmem:[#allocation8 + $0xc4] sm:$0xf]  ;;  %v2973_v13 = vld [vmem:[#allocation8 + $0xcc] sm:$0xf0] }
  0x5a   :  { %v2889_v10 = vld [vmem:[#allocation8 + $0x24] sm:$0xf0]  ;;  %v2976_v14 = vor.u32 %v3631_v12, %v2973_v13  ;;  %v4341_v18 = vld [vmem:[#allocation7] sm:$0x3f]  ;;  %v3676_v22 = vld [vmem:[#allocation8 + $0x22c] sm:$0xf] }
  0x5b   :  { %1419 = vmatpush.bf16.msra.mxu0 %v3080_v59  ;;  %v3000_v59 = vor.u32 %v3637_v56, %v2997_v58  ;;  %v185_v9 = vperm.slane %v4341_v18, 0  ;;  %v186_v19 = vperm.slane %v4341_v18, 1  ;;  %v3153_v25 = vld [vmem:[#allocation8 + $0x234] sm:$0xf0]  ;;  %v187_v30 = vperm.slane %v4341_v18, 2  ;;  %s4067_s29 = smov 96  }
  0x5c   :  { %1432 = vmatpush.bf16.msra.mxu1 %v3176_v52  ;;  %1453 = vmatpush.bf16.msra.mxu3 %v3428_v55  ;;  %v3731_v52 = vld [vmem:[#allocation8 + $0x3e0] sm:$0xf0]  ;;  %v2913_v55 = vld [vmem:[#allocation8 + $0x54] sm:$0xf0]  ;;  %v188_v31 = vperm.slane %v4341_v18, 3  ;;  %vm1911_vm3 = vcmask 64512  }
  0x5d   :  { %1441 = vmatpush.bf16.msra.mxu2 %v3320_v63  ;;  %v3368_v53 = vor.u32 %v3731_v52, %v3367_v51  ;;  %v2916_v57 = vor.u32 %v3616_v54, %v2913_v55  ;;  %v3260_v63 = vor.u32 %v3704_v61, %v3259_v60  ;;  %v3673_v34 = vld [vmem:[#allocation8 + $0x214] sm:$0xf]  ;;  %v3141_v35 = vld [vmem:[#allocation8 + $0x21c] sm:$0xf0]  ;;  %v3748_v43 = vld [vmem:[#allocation8 + $0x46c] sm:$0xf] }
  0x5e   :  { %v3144_v42 = vor.u32 %v3673_v34, %v3141_v35  ;;  %v3441_v44 = vld [vmem:[#allocation8 + $0x474] sm:$0xf0]  ;;  %v3129_v51 = vld [vmem:[#allocation8 + $0x204] sm:$0xf0]  ;;  %v3724_v52 = vld [vmem:[#allocation8 + $0x3ac] sm:$0xf] }
  0x5f   :  { %1420 = vmatpush.bf16.msra.mxu0 %v3068_v11  ;;  %v3694_v54 = vld [vmem:[#allocation8 + $0x2bc] sm:$0xf]  ;;  %v3225_v55 = vld [vmem:[#allocation8 + $0x2c4] sm:$0xf0]  ;;  %v3444_v58 = vor.u32 %v3748_v43, %v3441_v44  ;;  %v3745_v61 = vld [vmem:[#allocation8 + $0x454] sm:$0xf] }
  0x60   :  { %1433 = vmatpush.bf16.msra.mxu1 %v3164_v3  ;;  %1454 = vmatpush.bf16.msra.mxu3 %v3416_v8  ;;  %v2901_v3 = vld [vmem:[#allocation8 + $0x3c] sm:$0xf0]  ;;  %v3610_v8 = vld [vmem:[#allocation8 + $0x1c] sm:$0xf]  ;;  %v3405_v34 = vld [vmem:[#allocation8 + $0x42c] sm:$0xf0] }
  0x61   :  { %1442 = vmatpush.bf16.msra.mxu2 %v3308_v16  ;;  %v2904_v4 = vor.u32 %v3613_v2, %v2901_v3  ;;  %v2892_v11 = vor.u32 %v3610_v8, %v2889_v10  ;;  %v2877_v16 = vld [vmem:[#allocation8 + $0xc] sm:$0xf0]  ;;  %v3429_v62 = vld [vmem:[#allocation8 + $0x45c] sm:$0xf0]  ;;  %v3228_v2 = vor.u32 %v3694_v54, %v3225_v55  ;;  %v3691_v8 = vld [vmem:[#allocation8 + $0x2a4] sm:$0xf] }
  0x62   :  { %v3117_v3 = vld [vmem:[#allocation8 + $0x1ec] sm:$0xf0]  ;;  %v3661_v35 = vld [vmem:[#allocation8 + $0x1b4] sm:$0xf]  ;;  %v3189_v43 = vld [vmem:[#allocation8 + $0x27c] sm:$0xf0] }
  0x63   :  { %1465 = vmatpush.bf16.msrb.mxu0 %v2964_v15  ;;  %v3607_v15 = vld [vmem:[#allocation8 + $0x4] sm:$0xf]  ;;  %v3213_v10 = vld [vmem:[#allocation8 + $0x2ac] sm:$0xf0]  ;;  %v3081_v55 = vld [vmem:[#allocation8 + $0x1a4] sm:$0xf0] }
  0x64   :  { %1478 = vmatpush.bf16.msrb.mxu1 %v3060_v7  ;;  %1455 = vmatpush.bf16.msra.mxu3 %v3404_v21  ;;  %v2988_v7 = vor.u32 %v3634_v5, %v2985_v6  ;;  %v2880_v17 = vor.u32 %v3607_v15, %v2877_v16  ;;  %v3333_v5 = vld [vmem:[#allocation8 + $0x39c] sm:$0xf0]  ;;  %v189_v6 = vperm.slane %v4341_v18, 4  ;;  %v3715_v44 = vld [vmem:[#allocation8 + $0x364] sm:$0xf]  ;;  %s4068_s30 = smov 88  }
  0x65   :  { %1443 = vmatpush.bf16.msra.mxu2 %v3296_v27  ;;  %v3249_v27 = vld [vmem:[#allocation8 + $0x2f4] sm:$0xf0]  ;;  %s4069_s0 = smov 80   ;;  %s4071_s1 = smov 112  }
  0x66   :  { %s4072_s17 = smov 56   ;;  %s4073_s18 = smov 48  }
  0x67   :  { %1466 = vmatpush.bf16.msrb.mxu0 %v2952_v26  ;;  %v3700_v26 = vld [vmem:[#allocation8 + $0x2ec] sm:$0xf]  ;;  %s4074_s19 = smov 72   ;;  %s4075_s2 = smov 104  }
  0x68   :  { %1479 = vmatpush.bf16.msrb.mxu1 %v3048_v20  ;;  %1456 = vmatpush.bf16.msra.mxu3 %v3392_v33  ;;  %v3252_v33 = vor.u32 %v3700_v26, %v3249_v27  ;;  %v3718_v26 = vld [vmem:[#allocation8 + $0x37c] sm:$0xf]  ;;  %v3321_v27 = vld [vmem:[#allocation8 + $0x384] sm:$0xf0] }
  0x69   :  { %1444 = vmatpush.bf16.msra.mxu2 %v3284_v39  ;;  %v3237_v39 = vld [vmem:[#allocation8 + $0x2dc] sm:$0xf0] }
  0x6b   :  { %1467 = vmatpush.bf16.msrb.mxu0 %v2940_v38  ;;  %v3697_v38 = vld [vmem:[#allocation8 + $0x2d4] sm:$0xf] }
  0x6c   :  { %1480 = vmatpush.bf16.msrb.mxu1 %v3036_v32  ;;  %1457 = vmatpush.bf16.msra.mxu3 %v3380_v41  ;;  %v3156_v32 = vor.u32 %v3676_v22, %v3153_v25  ;;  %v3201_v25 = vld [vmem:[#allocation8 + $0x294] sm:$0xf0] }
  0x6d   :  { %1445 = vmatpush.bf16.msra.mxu2 %v3272_v50  ;;  %v3240_v50 = vor.u32 %v3697_v38, %v3237_v39 }
  0x6f   :  { %1468 = vmatpush.bf16.msrb.mxu0 %v2928_v45  ;;  %v3670_v45 = vld [vmem:[#allocation8 + $0x1fc] sm:$0xf] }
  0x70   :  { %1481 = vmatpush.bf16.msrb.mxu1 %v3024_v40  ;;  %1458 = vmatpush.bf16.msra.mxu3 %v3368_v53  ;;  %v3345_v53 = vld [vmem:[#allocation8 + $0x3b4] sm:$0xf0] }
  0x71   :  { %1446 = vmatpush.bf16.msra.mxu2 %v3260_v63  ;;  %v3348_v60 = vor.u32 %v3724_v52, %v3345_v53  ;;  %v3667_v63 = vld [vmem:[#allocation8 + $0x1e4] sm:$0xf]  ;;  %v3658_v52 = vld [vmem:[#allocation8 + $0x19c] sm:$0xf] }
  0x73   :  { %1469 = vmatpush.bf16.msrb.mxu0 %v2916_v57 }
  0x74   :  { %1482 = vmatpush.bf16.msrb.mxu1 %v3012_v47  ;;  %1459 = vmatpush.bf16.msra.mxu3 %v3356_v1 }
  0x77   :  { %1470 = vmatpush.bf16.msrb.mxu0 %v2904_v4  ;;  %v3721_v4 = vld [vmem:[#allocation8 + $0x394] sm:$0xf] }
  0x78   :  { %1483 = vmatpush.bf16.msrb.mxu1 %v3000_v59  ;;  %v3132_v59 = vor.u32 %v3670_v45, %v3129_v51  ;;  %v3336_v12 = vor.u32 %v3721_v4, %v3333_v5  ;;  %v3309_v45 = vld [vmem:[#allocation8 + $0x36c] sm:$0xf0]  ;;  %v3393_v51 = vld [vmem:[#allocation8 + $0x414] sm:$0xf0] }
  0x79   :  { %v3312_v54 = vor.u32 %v3715_v44, %v3309_v45  ;;  %v3069_v4 = vld [vmem:[#allocation8 + $0x18c] sm:$0xf0]  ;;  %v3703_v45 = vld [vmem:[#allocation8 + $0x304] sm:$0xf] }
  0x7b   :  { %1471 = vmatpush.bf16.msrb.mxu0 %v2892_v11  ;;  %v3432_v11 = vor.u32 %v3745_v61, %v3429_v62  ;;  %v3733_v61 = vld [vmem:[#allocation8 + $0x3f4] sm:$0xf]  ;;  %v3084_v62 = vor.u32 %v3658_v52, %v3081_v55  ;;  %v3243_v52 = vld [vmem:[#allocation8 + $0x2d8] sm:$0xf] }
  0x7c   :  { %1484 = vmatpush.bf16.msrb.mxu1 %v2988_v7  ;;  %v190_v7 = vperm.slane %v4341_v18, 5  ;;  %v3417_v18 = vld [vmem:[#allocation8 + $0x444] sm:$0xf0] }
  0x7f   :  { %1472 = vmatpush.bf16.msrb.mxu0 %v2880_v17  ;;  %v3120_v17 = vor.u32 %v3667_v63, %v3117_v3  ;;  %v3655_v3 = vld [vmem:[#allocation8 + $0x184] sm:$0xf] }
  0x80   :  { %1485 = vmatpush.bf16.msrb.mxu1 %v2976_v14 }
  0xb2   :  { %v338_v20 = vpop.f32.mrf.mxu0 }
  0xb3   :  { %v351_v21 = vpop.f32.mrf.mxu1  ;;  %v339_v23 = vadd.f32 %v338_v20, %v185_v9  ;;  %v3216_v9 = vor.u32 %v3691_v8, %v3213_v10  ;;  %v3664_v20 = vld [vmem:[#allocation8 + $0x1cc] sm:$0xf]  ;;  %v2967_v8 = vld [vmem:[#allocation8 + $0xb0] sm:$0xf]  ;;  %v3630_v10 = vld [vmem:[#allocation8 + $0xb8] sm:$0xf0] }
  0xb4   :  { %v352_v24 = vadd.f32 %v351_v21, %v186_v19  ;;  %v3742_v19 = vld [vmem:[#allocation8 + $0x43c] sm:$0xf] }
  0xb5   :  { %v407_v28 = vmax.f32 %v339_v23, 0.0  ;;  %v3105_v23 = vld [vmem:[#allocation8 + $0x1d4] sm:$0xf0] }
  0xb6   :  { %v408_v29 = vmax.f32 %v352_v24, 0.0  ;;  %v3688_v24 = vld [vmem:[#allocation8 + $0x28c] sm:$0xf] }
  0xb7   :  { %v4347_v36 = vpack.c.bf16 %v407_v28, %v407_v28 }
  0xb8   :  { %v4349_v37 = vpack.c.bf16 %v408_v29, %v408_v29 }
  0xb9   :  { %v364_v40 = vpop.f32.mrf.mxu2  ;;  %1395 = vmatmul.bf16.vlgmr.msrb.gmra.mxu2 %v4347_v36 }
  0xba   :  { %v377_v41 = vpop.f32.mrf.mxu3  ;;  %1408 = vmatmul.bf16.vlgmr.msrb.gmra.mxu3 %v4349_v37  ;;  %v365_v46 = vadd.f32 %v364_v40, %v187_v30  ;;  %1491 = vmatpush.bf16.msrb.mxu2 %v3156_v32  ;;  %v340_v48 = vpop.f32.mrf.mxu0  ;;  %v3420_v30 = vor.u32 %v3742_v19, %v3417_v18  ;;  %v3204_v32 = vor.u32 %v3688_v24, %v3201_v25  ;;  %v3369_v19 = vld [vmem:[#allocation8 + $0x3e4] sm:$0xf0]  ;;  %v3051_v24 = vld [vmem:[#allocation8 + $0x158] sm:$0xf]  ;;  %v3651_v25 = vld [vmem:[#allocation8 + $0x160] sm:$0xf0] }
  0xbb   :  { %v378_v47 = vadd.f32 %v377_v41, %v188_v31  ;;  %1504 = vmatpush.bf16.msrb.mxu3 %v3252_v33  ;;  %v353_v49 = vpop.f32.mrf.mxu1  ;;  %v3108_v31 = vor.u32 %v3664_v20, %v3105_v23  ;;  %v3739_v33 = vld [vmem:[#allocation8 + $0x424] sm:$0xf]  ;;  %v3324_v40 = vor.u32 %v3718_v26, %v3321_v27  ;;  %v3093_v41 = vld [vmem:[#allocation8 + $0x1bc] sm:$0xf0]  ;;  %v2968_v18 = vor.u32 %v3630_v10, %v2967_v8  ;;  %v3706_v27 = vld [vmem:[#allocation8 + $0x31c] sm:$0xf] }
  0xbc   :  { %v409_v56 = vmax.f32 %v365_v46, 0.0  ;;  %v3408_v46 = vor.u32 %v3739_v33, %v3405_v34  ;;  %v3627_v23 = vld [vmem:[#allocation8 + $0xa0] sm:$0xf0]  ;;  %v3255_v33 = vld [vmem:[#allocation8 + $0x2f0] sm:$0xf] }
  0xbd   :  { %v410_v57 = vmax.f32 %v378_v47, 0.0  ;;  %v3096_v47 = vor.u32 %v3661_v35, %v3093_v41  ;;  %v3702_v34 = vld [vmem:[#allocation8 + $0x2f8] sm:$0xf0]  ;;  %v2943_v35 = vld [vmem:[#allocation8 + $0x80] sm:$0xf] }
  0xbe   :  { %v4353_v0 = vpack.c.bf16 %v409_v56, %v409_v56  ;;  %1492 = vmatpush.bf16.msrb.mxu2 %v3144_v42  ;;  %v3685_v42 = vld [vmem:[#allocation8 + $0x274] sm:$0xf]  ;;  %v3682_v56 = vld [vmem:[#allocation8 + $0x25c] sm:$0xf]  ;;  %v3624_v41 = vld [vmem:[#allocation8 + $0x88] sm:$0xf0] }
  0xbf   :  { %v4355_v1 = vpack.c.bf16 %v410_v57, %v410_v57  ;;  %1505 = vmatpush.bf16.msrb.mxu3 %v3240_v50  ;;  %v3192_v48 = vor.u32 %v3685_v42, %v3189_v43  ;;  %v3736_v50 = vld [vmem:[#allocation8 + $0x40c] sm:$0xf]  ;;  %v3177_v57 = vld [vmem:[#allocation8 + $0x264] sm:$0xf0]  ;;  %v3039_v42 = vld [vmem:[#allocation8 + $0x140] sm:$0xf] }
  0xc0   :  { %1421 = vmatmul.bf16.vlgmr.msra.gmra.mxu0 %v4353_v0  ;;  %v3180_v63 = vor.u32 %v3682_v56, %v3177_v57  ;;  %v3648_v43 = vld [vmem:[#allocation8 + $0x148] sm:$0xf0]  ;;  %v3621_v56 = vld [vmem:[#allocation8 + $0x70] sm:$0xf0]  ;;  %v3027_v57 = vld [vmem:[#allocation8 + $0x128] sm:$0xf] }
  0xc1   :  { %1434 = vmatmul.bf16.vlgmr.msra.gmra.mxu1 %v4355_v1  ;;  %1517 = vmatpush.bf16.msra.mxu0 %v3348_v60  ;;  %v366_v14 = vpop.f32.mrf.mxu2  ;;  %v3396_v60 = vor.u32 %v3736_v50, %v3393_v51  ;;  %v2944_v50 = vor.u32 %v3624_v41, %v2943_v35  ;;  %v3040_v51 = vor.u32 %v3648_v43, %v3039_v42  ;;  %v3642_v8 = vld [vmem:[#allocation8 + $0x118] sm:$0xf0]  ;;  %v3111_v35 = vld [vmem:[#allocation8 + $0x1d0] sm:$0xf]  ;;  %v3195_v41 = vld [vmem:[#allocation8 + $0x278] sm:$0xf] }
  0xc2   :  { %1530 = vmatpush.bf16.msra.mxu1 %v3444_v58  ;;  %v379_v13 = vpop.f32.mrf.mxu3  ;;  %1493 = vmatpush.bf16.msrb.mxu2 %v3132_v59  ;;  %v390_v15 = vpop.f32.mrf.mxu0  ;;  %v3712_v58 = vld [vmem:[#allocation8 + $0x34c] sm:$0xf]  ;;  %v3297_v59 = vld [vmem:[#allocation8 + $0x354] sm:$0xf0]  ;;  %v3709_v14 = vld [vmem:[#allocation8 + $0x334] sm:$0xf] }
  0xc3   :  { %1506 = vmatpush.bf16.msrb.mxu3 %v3228_v2  ;;  %v403_v16 = vpop.f32.mrf.mxu1  ;;  %v391_v21 = vadd.f32 %v390_v15, %v189_v6  ;;  %v3381_v2 = vld [vmem:[#allocation8 + $0x3fc] sm:$0xf0]  ;;  %v3300_v5 = vor.u32 %v3712_v58, %v3297_v59  ;;  %v3679_v6 = vld [vmem:[#allocation8 + $0x244] sm:$0xf]  ;;  %v3645_v58 = vld [vmem:[#allocation8 + $0x130] sm:$0xf0] }
  0xc4   :  { %v404_v22 = vadd.f32 %v403_v16, %v190_v7  ;;  %v3165_v7 = vld [vmem:[#allocation8 + $0x24c] sm:$0xf0]  ;;  %v3384_v13 = vor.u32 %v3733_v61, %v3381_v2  ;;  %v3285_v15 = vld [vmem:[#allocation8 + $0x33c] sm:$0xf0]  ;;  %v3072_v16 = vor.u32 %v3655_v3, %v3069_v4  ;;  %v3147_v61 = vld [vmem:[#allocation8 + $0x218] sm:$0xf]  ;;  %v3028_v2 = vor.u32 %v3645_v58, %v3027_v57 }
  0xc5   :  { %v411_v28 = vmax.f32 %v391_v21, 0.0  ;;  %1518 = vmatpush.bf16.msra.mxu0 %v3336_v12  ;;  %v3654_v12 = vld [vmem:[#allocation8 + $0x178] sm:$0xf0]  ;;  %v2955_v21 = vld [vmem:[#allocation8 + $0x98] sm:$0xf] }
  0xc6   :  { %1531 = vmatpush.bf16.msra.mxu1 %v3432_v11  ;;  %v412_v29 = vmax.f32 %v404_v22, 0.0  ;;  %1494 = vmatpush.bf16.msrb.mxu2 %v3120_v17  ;;  %v3063_v11 = vld [vmem:[#allocation8 + $0x170] sm:$0xf]  ;;  %v3168_v17 = vor.u32 %v3679_v6, %v3165_v7  ;;  %v3288_v22 = vor.u32 %v3709_v14, %v3285_v15  ;;  %v3231_v3 = vld [vmem:[#allocation8 + $0x2c0] sm:$0xf] }
  0xc7   :  { %1507 = vmatpush.bf16.msrb.mxu3 %v3216_v9  ;;  %v4361_v38 = vpack.c.bf16 %v411_v28, %v411_v28  ;;  %v3730_v9 = vld [vmem:[#allocation8 + $0x3dc] sm:$0xf]  ;;  %v3064_v20 = vor.u32 %v3654_v12, %v3063_v11  ;;  %v3273_v28 = vld [vmem:[#allocation8 + $0x324] sm:$0xf0]  ;;  %v3696_v4 = vld [vmem:[#allocation8 + $0x2c8] sm:$0xf0] }
  0xc8   :  { %v4363_v39 = vpack.c.bf16 %v412_v29, %v412_v29  ;;  %v3372_v26 = vor.u32 %v3730_v9, %v3369_v19  ;;  %v3727_v29 = vld [vmem:[#allocation8 + $0x3c4] sm:$0xf]  ;;  %v3618_v6 = vld [vmem:[#allocation8 + $0x58] sm:$0xf0]  ;;  %v3015_v7 = vld [vmem:[#allocation8 + $0x110] sm:$0xf]  ;;  %v3232_v11 = vor.u32 %v3696_v4, %v3231_v3 }
  0xc9   :  { %1447 = vmatmul.bf16.vlgmr.msra.gmra.mxu2 %v4361_v38  ;;  %1519 = vmatpush.bf16.msra.mxu0 %v3324_v40  ;;  %v3276_v40 = vor.u32 %v3706_v27, %v3273_v28  ;;  %v3135_v12 = vld [vmem:[#allocation8 + $0x200] sm:$0xf]  ;;  %v3016_v15 = vor.u32 %v3642_v8, %v3015_v7  ;;  %v2907_v9 = vld [vmem:[#allocation8 + $0x38] sm:$0xf]  ;;  %v3615_v19 = vld [vmem:[#allocation8 + $0x40] sm:$0xf0] }
  0xca   :  { %1532 = vmatpush.bf16.msra.mxu1 %v3420_v30  ;;  %1495 = vmatpush.bf16.msrb.mxu2 %v3108_v31  ;;  %v392_v53 = vpop.f32.mrf.mxu0  ;;  %v3357_v30 = vld [vmem:[#allocation8 + $0x3cc] sm:$0xf0]  ;;  %v2956_v31 = vor.u32 %v3627_v23, %v2955_v21  ;;  %v3123_v23 = vld [vmem:[#allocation8 + $0x1e8] sm:$0xf]  ;;  %v3690_v28 = vld [vmem:[#allocation8 + $0x298] sm:$0xf0] }
  0xcb   :  { %1508 = vmatpush.bf16.msrb.mxu3 %v3204_v32  ;;  %v405_v49 = vpop.f32.mrf.mxu1  ;;  %v3052_v32 = vor.u32 %v3651_v25, %v3051_v24  ;;  %v3360_v44 = vor.u32 %v3727_v29, %v3357_v30  ;;  %v3699_v53 = vld [vmem:[#allocation8 + $0x2e0] sm:$0xf0]  ;;  %v3669_v24 = vld [vmem:[#allocation8 + $0x1f0] sm:$0xf0]  ;;  %v2908_v25 = vor.u32 %v3615_v19, %v2907_v9  ;;  %v3207_v27 = vld [vmem:[#allocation8 + $0x290] sm:$0xf] }
  0xcc   :  { %1460 = vmatmul.bf16.vlgmr.msra.gmra.mxu3 %v4363_v39  ;;  %v3678_v49 = vld [vmem:[#allocation8 + $0x238] sm:$0xf0]  ;;  %v2895_v29 = vld [vmem:[#allocation8 + $0x20] sm:$0xf]  ;;  %v3612_v30 = vld [vmem:[#allocation8 + $0x28] sm:$0xf0] }
  0xcd   :  { %1520 = vmatpush.bf16.msra.mxu0 %v3312_v54  ;;  %v2931_v54 = vld [vmem:[#allocation8 + $0x68] sm:$0xf]  ;;  %v2896_v42 = vor.u32 %v3612_v30, %v2895_v29  ;;  %v3723_v3 = vld [vmem:[#allocation8 + $0x3a0] sm:$0xf0]  ;;  %v3435_v4 = vld [vmem:[#allocation8 + $0x458] sm:$0xf] }
  0xce   :  { %1533 = vmatpush.bf16.msra.mxu1 %v3408_v46  ;;  %1496 = vmatpush.bf16.msrb.mxu2 %v3096_v47  ;;  %v3261_v46 = vld [vmem:[#allocation8 + $0x30c] sm:$0xf0]  ;;  %v3256_v47 = vor.u32 %v3702_v34, %v3255_v33  ;;  %v3124_v33 = vor.u32 %v3669_v24, %v3123_v23  ;;  %v3208_v34 = vor.u32 %v3690_v28, %v3207_v27  ;;  %v3087_v7 = vld [vmem:[#allocation8 + $0x1a0] sm:$0xf]  ;;  %v3660_v8 = vld [vmem:[#allocation8 + $0x1a8] sm:$0xf0] }
  0xcf   :  { %1509 = vmatpush.bf16.msrb.mxu3 %v3192_v48  ;;  %v3159_v48 = vld [vmem:[#allocation8 + $0x230] sm:$0xf]  ;;  %v3264_v55 = vor.u32 %v3703_v45, %v3261_v46  ;;  %v2883_v45 = vld [vmem:[#allocation8 + $0x8] sm:$0xf]  ;;  %v3609_v46 = vld [vmem:[#allocation8 + $0x10] sm:$0xf0] }
  0xd0   :  { %1473 = vmatmul.bf16.vlgmr.msrb.gmra.mxu0 %v4347_v36  ;;  %v3160_v59 = vor.u32 %v3678_v49, %v3159_v48  ;;  %v3633_v48 = vld [vmem:[#allocation8 + $0xd0] sm:$0xf0]  ;;  %v3351_v49 = vld [vmem:[#allocation8 + $0x3b0] sm:$0xf]  ;;  %v2884_v57 = vor.u32 %v3609_v46, %v2883_v45  ;;  %v3744_v9 = vld [vmem:[#allocation8 + $0x448] sm:$0xf0] }
  0xd1   :  { %1486 = vmatmul.bf16.vlgmr.msrb.gmra.mxu1 %v4349_v37  ;;  %1521 = vmatpush.bf16.msra.mxu0 %v3300_v5  ;;  %v2919_v5 = vld [vmem:[#allocation8 + $0x50] sm:$0xf]  ;;  %v3315_v24 = vld [vmem:[#allocation8 + $0x368] sm:$0xf]  ;;  %v3741_v27 = vld [vmem:[#allocation8 + $0x430] sm:$0xf0] }
  0xd2   :  { %1534 = vmatpush.bf16.msra.mxu1 %v3396_v60  ;;  %1497 = vmatpush.bf16.msrb.mxu2 %v3084_v62  ;;  %v3244_v60 = vor.u32 %v3699_v53, %v3243_v52  ;;  %v3675_v62 = vld [vmem:[#allocation8 + $0x220] sm:$0xf0]  ;;  %v2920_v14 = vor.u32 %v3618_v6, %v2919_v5  ;;  %v3447_v52 = vld [vmem:[#allocation8 + $0x470] sm:$0xf]  ;;  %v3750_v53 = vld [vmem:[#allocation8 + $0x478] sm:$0xf0] }
  0xd3   :  { %1510 = vmatpush.bf16.msrb.mxu3 %v3180_v63  ;;  %v2932_v63 = vor.u32 %v3621_v56, %v2931_v54  ;;  %v3148_v10 = vor.u32 %v3675_v62, %v3147_v61  ;;  %v3663_v56 = vld [vmem:[#allocation8 + $0x1c0] sm:$0xf0]  ;;  %v3448_v62 = vor.u32 %v3750_v53, %v3447_v52  ;;  %v3303_v29 = vld [vmem:[#allocation8 + $0x350] sm:$0xf]  ;;  %v3375_v45 = vld [vmem:[#allocation8 + $0x3e0] sm:$0xf] }
  0xd4   :  { %v3747_v5 = vld [vmem:[#allocation8 + $0x460] sm:$0xf0]  ;;  %v3399_v30 = vld [vmem:[#allocation8 + $0x410] sm:$0xf]  ;;  %v3732_v46 = vld [vmem:[#allocation8 + $0x3e8] sm:$0xf0] }
  0xd5   :  { %1522 = vmatpush.bf16.msra.mxu0 %v3288_v22  ;;  %v3758_v53 = vld [vmem:[%s4686_s6 + $0x38] sm:$0xff] }
  0xd6   :  { %1535 = vmatpush.bf16.msra.mxu1 %v3384_v13  ;;  %1498 = vmatpush.bf16.msrb.mxu2 %v3072_v16  ;;  %v3672_v13 = vld [vmem:[#allocation8 + $0x208] sm:$0xf0]  ;;  %v3219_v16 = vld [vmem:[#allocation8 + $0x2a8] sm:$0xf] }
  0xd7   :  { %1511 = vmatpush.bf16.msrb.mxu3 %v3168_v17  ;;  %v3693_v17 = vld [vmem:[#allocation8 + $0x2b0] sm:$0xf0]  ;;  %v3136_v21 = vor.u32 %v3672_v13, %v3135_v12  ;;  %v3436_v13 = vor.u32 %v3747_v5, %v3435_v4  ;;  %v3765_v4 = vld [vmem:[%s4686_s6 + $0x70] sm:$0xff]  ;;  %v3751_v5 = vld [vmem:[%s4686_s6] sm:$0xff] }
  0xd8   :  { %v3220_v22 = vor.u32 %v3693_v17, %v3219_v16  ;;  %v3720_v16 = vld [vmem:[#allocation8 + $0x388] sm:$0xf0]  ;;  %v3423_v17 = vld [vmem:[#allocation8 + $0x440] sm:$0xf] }
  0xd9   :  { %1499 = vmatmul.bf16.vlgmr.msrb.gmra.mxu2 %v4353_v0  ;;  %1523 = vmatpush.bf16.msra.mxu0 %v3276_v40  ;;  %v3666_v40 = vld [vmem:[#allocation8 + $0x1d8] sm:$0xf0] }
  0xda   :  { %1543 = vmatpush.bf16.msra.mxu2 %v2968_v18  ;;  %1536 = vmatpush.bf16.msra.mxu1 %v3372_v26  ;;  %v3003_v18 = vld [vmem:[#allocation8 + $0xf8] sm:$0xf] }
  0xdb   :  { %1556 = vmatpush.bf16.msra.mxu3 %v3064_v20  ;;  %v3639_v20 = vld [vmem:[#allocation8 + $0x100] sm:$0xf0] }
  0xdc   :  { %1512 = vmatmul.bf16.vlgmr.msrb.gmra.mxu3 %v4355_v1  ;;  %v3004_v26 = vor.u32 %v3639_v20, %v3003_v18  ;;  %v3075_v18 = vld [vmem:[#allocation8 + $0x188] sm:$0xf]  ;;  %v3657_v20 = vld [vmem:[#allocation8 + $0x190] sm:$0xf0] }
  0xdd   :  { %1524 = vmatpush.bf16.msra.mxu0 %v3264_v55  ;;  %v3099_v55 = vld [vmem:[#allocation8 + $0x1b8] sm:$0xf]  ;;  %v3076_v23 = vor.u32 %v3657_v20, %v3075_v18 }
  0xde   :  { %1544 = vmatpush.bf16.msra.mxu2 %v2956_v31  ;;  %1537 = vmatpush.bf16.msra.mxu1 %v3360_v44  ;;  %v2991_v31 = vld [vmem:[#allocation8 + $0xe0] sm:$0xf]  ;;  %v3687_v44 = vld [vmem:[#allocation8 + $0x280] sm:$0xf0] }
  0xdf   :  { %1557 = vmatpush.bf16.msra.mxu3 %v3052_v32  ;;  %v3636_v32 = vld [vmem:[#allocation8 + $0xe8] sm:$0xf0]  ;;  %v3196_v54 = vor.u32 %v3687_v44, %v3195_v41  ;;  %v3735_v41 = vld [vmem:[#allocation8 + $0x400] sm:$0xf0] }
  0xe0   :  { %1525 = vmatmul.bf16.vlgmr.msra.gmra.mxu0 %v4361_v38  ;;  %v2992_v43 = vor.u32 %v3636_v32, %v2991_v31  ;;  %v3738_v31 = vld [vmem:[#allocation8 + $0x418] sm:$0xf0]  ;;  %v3708_v44 = vld [vmem:[#allocation8 + $0x328] sm:$0xf0] }
  0xe1   :  { %1538 = vmatmul.bf16.vlgmr.msra.gmra.mxu1 %v4363_v39  ;;  %1569 = vmatpush.bf16.msrb.mxu0 %v3160_v59  ;;  %v3183_v59 = vld [vmem:[#allocation8 + $0x260] sm:$0xf] }
  0xe2   :  { %1582 = vmatpush.bf16.msrb.mxu1 %v3256_v47  ;;  %1545 = vmatpush.bf16.msra.mxu2 %v2944_v50  ;;  %v2979_v47 = vld [vmem:[#allocation8 + $0xc8] sm:$0xf]  ;;  %v3112_v50 = vor.u32 %v3666_v40, %v3111_v35  ;;  %v3711_v35 = vld [vmem:[#allocation8 + $0x340] sm:$0xf0]  ;;  %v3387_v40 = vld [vmem:[#allocation8 + $0x3f8] sm:$0xf] }
  0xe3   :  { %1558 = vmatpush.bf16.msra.mxu3 %v3040_v51  ;;  %v3726_v51 = vld [vmem:[#allocation8 + $0x3b8] sm:$0xf0]  ;;  %v2980_v58 = vor.u32 %v3633_v48, %v2979_v47  ;;  %v3267_v48 = vld [vmem:[#allocation8 + $0x308] sm:$0xf] }
  0xe4   :  { %v3352_v61 = vor.u32 %v3726_v51, %v3351_v49  ;;  %v3705_v49 = vld [vmem:[#allocation8 + $0x310] sm:$0xf0] }
  0xe5   :  { %1570 = vmatpush.bf16.msrb.mxu0 %v3148_v10  ;;  %v3171_v10 = vld [vmem:[#allocation8 + $0x248] sm:$0xf]  ;;  %v3729_v51 = vld [vmem:[#allocation8 + $0x3d0] sm:$0xf0]  ;;  %v3268_v52 = vor.u32 %v3705_v49, %v3267_v48  ;;  %v3773_v49 = vld [vmem:[%s4686_s6 + $0xb0] sm:$0xff] }
  0xe6   :  { %1583 = vmatpush.bf16.msrb.mxu1 %v3244_v60  ;;  %1546 = vmatpush.bf16.msra.mxu2 %v2932_v63  ;;  %v3684_v60 = vld [vmem:[#allocation8 + $0x268] sm:$0xf0]  ;;  %v3339_v63 = vld [vmem:[#allocation8 + $0x398] sm:$0xf] }
  0xe7   :  { %1559 = vmatpush.bf16.msra.mxu3 %v3028_v2  ;;  %v3100_v2 = vor.u32 %v3663_v56, %v3099_v55  ;;  %v3184_v6 = vor.u32 %v3684_v60, %v3183_v59  ;;  %v3340_v12 = vor.u32 %v3723_v3, %v3339_v63  ;;  %v3757_v55 = vld [vmem:[%s4686_s6 + $0x30] sm:$0xff]  ;;  %v1871_v56 = vld [vmem:[%s4688_s8 + $0x18] sm:$0xff]  ;;  %v1868_v59 = vld [vmem:[%s4688_s8] sm:$0xff] }
  0xe8   :  { %v3756_v60 = vld [vmem:[%s4686_s6 + $0x28] sm:$0xff]  ;;  %v3753_v63 = vld [vmem:[%s4686_s6 + $0x10] sm:$0xff] }
  0xe9   :  { %1571 = vmatpush.bf16.msrb.mxu0 %v3136_v21  ;;  %v3752_v3 = vld [vmem:[%s4686_s6 + $0x8] sm:$0xff] }
  0xea   :  { %1584 = vmatpush.bf16.msrb.mxu1 %v3232_v11  ;;  %1547 = vmatpush.bf16.msra.mxu2 %v2920_v14  ;;  %v3681_v11 = vld [vmem:[#allocation8 + $0x250] sm:$0xf0]  ;;  %v3327_v14 = vld [vmem:[#allocation8 + $0x380] sm:$0xf] }
  0xeb   :  { %1560 = vmatpush.bf16.msra.mxu3 %v3016_v15  ;;  %v3088_v15 = vor.u32 %v3660_v8, %v3087_v7  ;;  %v3172_v19 = vor.u32 %v3681_v11, %v3171_v10  ;;  %v3328_v21 = vor.u32 %v3720_v16, %v3327_v14  ;;  %v3763_v7 = vld [vmem:[%s4686_s6 + $0x60] sm:$0xff]  ;;  %v3762_v10 = vld [vmem:[%s4686_s6 + $0x58] sm:$0xff]  ;;  %v3761_v16 = vld [vmem:[%s4686_s6 + $0x50] sm:$0xff] }
  0xec   :  { %v4438_v8 = vld [vmem:[%s4685_s5] sm:$0x7] }
  0xed   :  { %1572 = vmatpush.bf16.msrb.mxu0 %v3124_v33  ;;  %v3400_v33 = vor.u32 %v3738_v31, %v3399_v30  ;;  %v613_v11 = vperm.slane %v4438_v8, 0  ;;  %v614_v31 = vperm.slane %v4438_v8, 1 }
  0xee   :  { %1585 = vmatpush.bf16.msrb.mxu1 %v3220_v22  ;;  %1548 = vmatpush.bf16.msra.mxu2 %v2908_v25  ;;  %v3424_v22 = vor.u32 %v3744_v9, %v3423_v17  ;;  %v3717_v25 = vld [vmem:[#allocation8 + $0x370] sm:$0xf0] }
  0xef   :  { %1561 = vmatpush.bf16.msra.mxu3 %v3004_v26  ;;  %v3411_v26 = vld [vmem:[#allocation8 + $0x428] sm:$0xf]  ;;  %v3316_v28 = vor.u32 %v3717_v25, %v3315_v24  ;;  %v3760_v9 = vld [vmem:[%s4686_s6 + $0x48] sm:$0xff] }
  0xf1   :  { %1573 = vmatpush.bf16.msrb.mxu0 %v3112_v50  ;;  %v3363_v50 = vld [vmem:[#allocation8 + $0x3c8] sm:$0xf] }
  0xf2   :  { %1586 = vmatpush.bf16.msrb.mxu1 %v3208_v34  ;;  %1549 = vmatpush.bf16.msra.mxu2 %v2896_v42  ;;  %v3291_v34 = vld [vmem:[#allocation8 + $0x338] sm:$0xf] }
  0xf3   :  { %1562 = vmatpush.bf16.msra.mxu3 %v2992_v43  ;;  %v3292_v42 = vor.u32 %v3711_v35, %v3291_v34  ;;  %v3279_v43 = vld [vmem:[#allocation8 + $0x320] sm:$0xf] }
  0xf4   :  { %v3280_v47 = vor.u32 %v3708_v44, %v3279_v43 }
  0xf5   :  { %1574 = vmatpush.bf16.msrb.mxu0 %v3100_v2  ;;  %v4416_v2 = vld [vmem:[#allocation2 + $0x8] sm:$0xff] }
  0xf6   :  { %1587 = vmatpush.bf16.msrb.mxu1 %v3196_v54  ;;  %1550 = vmatpush.bf16.msra.mxu2 %v2884_v57  ;;  %v3364_v54 = vor.u32 %v3729_v51, %v3363_v50  ;;  %v1870_v57 = vld [vmem:[%s4688_s8 + $0x10] sm:$0xff] }
  0xf7   :  { %1563 = vmatpush.bf16.msra.mxu3 %v2980_v58  ;;  %v1869_v58 = vld [vmem:[%s4688_s8 + $0x8] sm:$0xff]  ;;  %s4070_s8 = smov 120  }
  0xf9   :  { %1551 = vmatmul.bf16.vlgmr.msra.gmra.mxu2 %v4347_v36  ;;  %1575 = vmatpush.bf16.msrb.mxu0 %v3088_v15  ;;  %v3412_v36 = vor.u32 %v3741_v27, %v3411_v26 }
  0xfa   :  { %1595 = vmatpush.bf16.msrb.mxu2 %v3352_v61  ;;  %1588 = vmatpush.bf16.msrb.mxu1 %v3184_v6  ;;  %v4400_v61 = vld [vmem:[#allocation2] sm:$0xff]  ;;  %v3764_v6 = vld [vmem:[%s4686_s6 + $0x68] sm:$0xff] }
  0xfb   :  { %1608 = vmatpush.bf16.msrb.mxu3 %v3448_v62  ;;  %v3766_v62 = vld [vmem:[%s4686_s6 + $0x78] sm:$0xff] }
  0xfc   :  { %1564 = vmatmul.bf16.vlgmr.msra.gmra.mxu3 %v4349_v37  ;;  %v3714_v37 = vld [vmem:[#allocation8 + $0x358] sm:$0xf0] }
  0xfd   :  { %1576 = vmatpush.bf16.msrb.mxu0 %v3076_v23  ;;  %v3304_v32 = vor.u32 %v3714_v37, %v3303_v29  ;;  %v3759_v23 = vld [vmem:[%s4686_s6 + $0x40] sm:$0xff] }
  0xfe   :  { %1596 = vmatpush.bf16.msrb.mxu2 %v3340_v12  ;;  %1589 = vmatpush.bf16.msrb.mxu1 %v3172_v19 }
  0xff   :  { %1609 = vmatpush.bf16.msrb.mxu3 %v3436_v13 }
 0x100   :  { %1577 = vmatmul.bf16.vlgmr.msrb.gmra.mxu0 %v4353_v0  ;;  %v3376_v0 = vor.u32 %v3732_v46, %v3375_v45  ;;  %v3774_v45 = vld [vmem:[%s4686_s6 + $0xb8] sm:$0xff] }
 0x101   :  { %1590 = vmatmul.bf16.vlgmr.msrb.gmra.mxu1 %v4355_v1  ;;  %v3388_v1 = vor.u32 %v3735_v41, %v3387_v40  ;;  %1823 = vmatpush.bf16.msra.mxu0 %v3758_v53 }
 0x102   :  { %1597 = vmatpush.bf16.msrb.mxu2 %v3328_v21  ;;  %1836 = vmatpush.bf16.msra.mxu1 %v3766_v62 }
 0x103   :  { %1610 = vmatpush.bf16.msrb.mxu3 %v3424_v22 }
 0x105   :  { %1824 = vmatpush.bf16.msra.mxu0 %v3757_v55 }
 0x106   :  { %1598 = vmatpush.bf16.msrb.mxu2 %v3316_v28  ;;  %1837 = vmatpush.bf16.msra.mxu1 %v3765_v4 }
 0x107   :  { %1611 = vmatpush.bf16.msrb.mxu3 %v3412_v36 }
 0x109   :  { %1825 = vmatpush.bf16.msra.mxu0 %v3756_v60  ;;  %v3769_v60 = vld [vmem:[%s4686_s6 + $0x90] sm:$0xff] }
 0x10a   :  { %1599 = vmatpush.bf16.msrb.mxu2 %v3304_v32  ;;  %1838 = vmatpush.bf16.msra.mxu1 %v3764_v6 }
 0x10b   :  { %1612 = vmatpush.bf16.msrb.mxu3 %v3400_v33 }
 0x10e   :  { %1600 = vmatpush.bf16.msrb.mxu2 %v3292_v42  ;;  %1839 = vmatpush.bf16.msra.mxu1 %v3763_v7 }
 0x10f   :  { %1613 = vmatpush.bf16.msrb.mxu3 %v3388_v1 }
 0x112   :  { %1601 = vmatpush.bf16.msrb.mxu2 %v3280_v47  ;;  %1840 = vmatpush.bf16.msra.mxu1 %v3762_v10  ;;  %v615_v10 = vperm.slane %v4438_v8, 2 }
 0x113   :  { %1614 = vmatpush.bf16.msrb.mxu3 %v3376_v0 }
 0x116   :  { %1602 = vmatpush.bf16.msrb.mxu2 %v3268_v52  ;;  %1841 = vmatpush.bf16.msra.mxu1 %v3761_v16  ;;  %v3772_v52 = vld [vmem:[%s4686_s6 + $0xa8] sm:$0xff] }
 0x117   :  { %1615 = vmatpush.bf16.msrb.mxu3 %v3364_v54 }
 0x119   :  { %1603 = vmatmul.bf16.vlgmr.msrb.gmra.mxu2 %v4361_v38  ;;  %v3755_v38 = vld [vmem:[%s4686_s6 + $0x20] sm:$0xff] }
 0x11a   :  { %1616 = vmatmul.bf16.vlgmr.msrb.gmra.mxu3 %v4363_v39  ;;  %1826 = vmatpush.bf16.msra.mxu0 %v3755_v38  ;;  %v3754_v39 = vld [vmem:[%s4686_s6 + $0x18] sm:$0xff]  ;;  %v3768_v38 = vld [vmem:[%s4686_s6 + $0x88] sm:$0xff] }
 0x11b   :  { %1895 = vmatpush.msra.mxu3 %v1871_v56  ;;  %1842 = vmatpush.bf16.msra.mxu1 %v3760_v9 }
 0x11c   :  { %1849 = vmatpush.bf16.msra.mxu2 %v3774_v45 }
 0x11d   :  { %1896 = vmatpush.msra.mxu3 %v1870_v57  ;;  %v3771_v57 = vld [vmem:[%s4686_s6 + $0xa0] sm:$0xff] }
 0x11e   :  { %1827 = vmatpush.bf16.msra.mxu0 %v3754_v39 }
 0x11f   :  { %1897 = vmatpush.msra.mxu3 %v1869_v58  ;;  %1843 = vmatpush.bf16.msra.mxu1 %v3759_v23  ;;  %v3806_v23 = vld [vmem:[#allocation11] ss:$0 sm:$0xff] }
 0x120   :  { %1850 = vmatpush.bf16.msra.mxu2 %v3773_v49 }
 0x121   :  { %1898 = vmatpush.msra.mxu3 %v1868_v59  ;;  %v3770_v59 = vld [vmem:[%s4686_s6 + $0x98] sm:$0xff] }
 0x122   :  { %1828 = vmatpush.bf16.msra.mxu0 %v3753_v63 }
 0x124   :  { %1851 = vmatpush.bf16.msra.mxu2 %v3772_v52  ;;  %v2037_v52 = vld [vmem:[%s4690_s10] sm:$0xff] }
 0x126   :  { %1829 = vmatpush.bf16.msra.mxu0 %v3752_v3  ;;  %v3767_v3 = vld [vmem:[%s4686_s6 + $0x80] sm:$0xff]  ;;  %s4066_s6 = smov 64  }
 0x128   :  { %1852 = vmatpush.bf16.msra.mxu2 %v3771_v57 }
 0x12a   :  { %3545 = vmatmul.msk.f32.vlgmr.msra.gmra.mxu3 %vm1876_vm2, %v4400_v61  ;;  %1830 = vmatpush.bf16.msra.mxu0 %v3751_v5 }
 0x12c   :  { %1853 = vmatpush.bf16.msra.mxu2 %v3770_v59 }
 0x130   :  { %1854 = vmatpush.bf16.msra.mxu2 %v3769_v60 }
 0x132   :  { %3546 = vmatmul.msk.f32.gmra.mxu3 %vm1876_vm2, %v4416_v2 }
 0x134   :  { %1855 = vmatpush.bf16.msra.mxu2 %v3768_v38 }
 0x138   :  { %1856 = vmatpush.bf16.msra.mxu2 %v3767_v3 }
 0x13c   :  { %v1396_v12 = vpop.f32.mrf.mxu2 }
 0x13d   :  { %v1409_v13 = vpop.f32.mrf.mxu3  ;;  %v1422_v14 = vpop.f32.mrf.mxu0  ;;  %v1397_v17 = vadd.f32 %v1396_v12, %v613_v11 }
 0x13e   :  { %v1435_v15 = vpop.f32.mrf.mxu1 }
 0x13f   :  { %v1410_v19 = vadd.f32 %v1409_v13, %v1397_v17 }
 0x141   :  { %v1423_v24 = vadd.f32 %v1422_v14, %v1410_v19 }
 0x143   :  { %v1436_v25 = vadd.f32 %v1435_v15, %v1423_v24 }
 0x144   :  { %v1398_v18 = vpop.f32.mrf.mxu2 }
 0x145   :  { %v1411_v20 = vpop.f32.mrf.mxu3  ;;  %v1424_v21 = vpop.f32.mrf.mxu0 }
 0x146   :  { %v1437_v22 = vpop.f32.mrf.mxu1 }
 0x14c   :  { %v1448_v26 = vpop.f32.mrf.mxu2 }
 0x14d   :  { %v1449_v27 = vadd.f32 %v1448_v26, %v1436_v25  ;;  %v1474_v28 = vpop.f32.mrf.mxu0 }
 0x14e   :  { %v1487_v36 = vpop.f32.mrf.mxu1  ;;  %v1475_v41 = vadd.f32 %v1474_v28, %v614_v31 }
 0x14f   :  { %v1461_v29 = vpop.f32.mrf.mxu3 }
 0x150   :  { %v1462_v37 = vadd.f32 %v1461_v29, %v1449_v27  ;;  %v1488_v42 = vadd.f32 %v1487_v36, %v1475_v41  ;;  %v3807_v36 = vld [vmem:[#allocation10] ss:$0 sm:$0xff] }
 0x152   :  { %v1621_v30 = vmax.f32 %v1462_v37, 0.0 }
 0x154   :  { %v1624_v32 = vpack.c.bf16 %v1621_v30, %v1621_v30  ;;  %v1450_v33 = vpop.f32.mrf.mxu2 }
 0x155   :  { %v1476_v35 = vpop.f32.mrf.mxu0 }
 0x156   :  { %v1489_v34 = vpop.f32.mrf.mxu1  ;;  %1831 = vmatmul.bf16.vlgmr.msra.gmra.mxu0 %v1624_v32 }
 0x157   :  { %v1463_v40 = vpop.f32.mrf.mxu3 }
 0x15c   :  { %v1500_v1 = vpop.f32.mrf.mxu2 }
 0x15d   :  { %v1501_v43 = vadd.f32 %v1500_v1, %v1488_v42  ;;  %v1526_v0 = vpop.f32.mrf.mxu0 }
 0x15e   :  { %v1539_v44 = vpop.f32.mrf.mxu1 }
 0x15f   :  { %v1513_v46 = vpop.f32.mrf.mxu3 }
 0x160   :  { %v1514_v47 = vadd.f32 %v1513_v46, %v1501_v43 }
 0x162   :  { %v1527_v48 = vadd.f32 %v1526_v0, %v1514_v47 }
 0x164   :  { %v1540_v50 = vadd.f32 %v1539_v44, %v1527_v48  ;;  %v1502_v51 = vpop.f32.mrf.mxu2 }
 0x165   :  { %v1528_v58 = vpop.f32.mrf.mxu0 }
 0x166   :  { %v1541_v53 = vpop.f32.mrf.mxu1  ;;  %v1622_v54 = vmax.f32 %v1540_v50, 0.0 }
 0x167   :  { %v1515_v55 = vpop.f32.mrf.mxu3 }
 0x168   :  { %v1625_v56 = vpack.c.bf16 %v1622_v54, %v1622_v54 }
 0x16a   :  { %1844 = vmatmul.bf16.vlgmr.msra.gmra.mxu1 %v1625_v56 }
 0x17c   :  { %v1552_v39 = vpop.f32.mrf.mxu2 }
 0x17d   :  { %v1578_v4 = vpop.f32.mrf.mxu0  ;;  %v1553_v12 = vadd.f32 %v1552_v39, %v615_v10 }
 0x17e   :  { %v1591_v63 = vpop.f32.mrf.mxu1 }
 0x17f   :  { %v1565_v62 = vpop.f32.mrf.mxu3 }
 0x180   :  { %v1566_v13 = vadd.f32 %v1565_v62, %v1553_v12 }
 0x182   :  { %v1579_v14 = vadd.f32 %v1578_v4, %v1566_v13 }
 0x184   :  { %v1554_v5 = vpop.f32.mrf.mxu2  ;;  %v1592_v15 = vadd.f32 %v1591_v63, %v1579_v14 }
 0x185   :  { %v1580_v11 = vpop.f32.mrf.mxu0 }
 0x186   :  { %v1593_v7 = vpop.f32.mrf.mxu1 }
 0x187   :  { %v1567_v6 = vpop.f32.mrf.mxu3 }
 0x19c   :  { %v1604_v16 = vpop.f32.mrf.mxu2 }
 0x19d   :  { %v1605_v17 = vadd.f32 %v1604_v16, %v1592_v15  ;;  %v1617_v9 = vpop.f32.mrf.mxu3 }
 0x19f   :  { %v1618_v19 = vadd.f32 %v1617_v9, %v1605_v17 }
 0x1a1   :  { %v1623_v18 = vmax.f32 %v1618_v19, 0.0 }
 0x1a3   :  { %v1626_v20 = vpack.c.bf16 %v1623_v18, %v1623_v18 }
 0x1a4   :  { %v1606_v21 = vpop.f32.mrf.mxu2 }
 0x1a5   :  { %v1619_v22 = vpop.f32.mrf.mxu3  ;;  %1857 = vmatmul.bf16.vlgmr.msra.gmra.mxu2 %v1626_v20 }
 0x1ad   :  { %v1900_v24 = vpop.f32.mrf.mxu3 }
 0x1ae   :  { %v4479_v25 = vadd.f32 %v3806_v23, %v1900_v24 }
 0x1b0   :  { %1985 = vrot.lane.b32.xlu2 %v4479_v25, %s4066_s6  ;;  %1909 = vrot.lane.b32.xlu0 %v4479_v25, %s4067_s29 }
 0x1b5   :  { %v1903_v8 = vpop.f32.mrf.mxu3 }
 0x1b6   :  { %v4484_v26 = vadd.f32 %v3806_v23, %v1903_v8 }
 0x1b8   :  { %1937 = vrot.lane.b32.xlu0 %v4484_v26, %s4067_s29 }
 0x1d3   :  { %v1832_v27 = vpop.f32.mrf.mxu0 }
 0x1d4   :  { %v1833_v29 = vadd.f32 %v3807_v36, %v1832_v27 }
 0x1db   :  { %v1834_v28 = vpop.f32.mrf.mxu0 }
 0x1e7   :  { %v1845_v37 = vpop.f32.mrf.mxu1 }
 0x1e8   :  { %v1846_v30 = vadd.f32 %v1845_v37, %v1833_v29  ;;  %v2199_v29 = vld [vmem:[%s4690_s10 + $0x8] sm:$0xff] }
 0x1ef   :  { %v1847_v31 = vpop.f32.mrf.mxu1 }
 0x20a   :  { %v1986_v33 = vpop.permute.xlu2 %1985 }
 0x222   :  { %v1910_v32 = vpop.permute.xlu0 %1909 }
 0x223   :  { %3547 = vmatpush.xpose.msk.msrb.mxu3 %vm1911_vm3, %v1910_v32 }
 0x226   :  { %3548 = vmatmul.msk.f32.vlgmr.msrb.gmra.mxu3 %vm1911_vm3, %v4479_v25 }
 0x227   :  { %2006 = vmatpush.msra.mxu3 %v1986_v33 }
 0x228   :  { %v1858_v34 = vpop.f32.mrf.mxu2 }
 0x229   :  { %v4490_v35 = vadd.f32 %v1858_v34, %v1846_v30 }
 0x22a   :  { %v1938_v40 = vpop.permute.xlu0 %1937 }
 0x22b   :  { %3549 = vmatpush.xpose.msk.msrb.mxu1 %vm1911_vm3, %v1938_v40 }
 0x22e   :  { %3550 = vmatmul.msk.f32.vlgmr.msrb.gmra.mxu1 %vm1911_vm3, %v4484_v26 }
 0x22f   :  { %2059 = vmatpush.msra.mxu1 %v2037_v52 }
 0x230   :  { %v1860_v41 = vpop.f32.mrf.mxu2 }
 0x2a9   :  { %v1933_v42 = vpop.f32.mrf.mxu3 }
 0x2aa   :  { %v1963_v1 = vsel %vm1911_vm3, %v1933_v42, -inf }
 0x2ab   :  { %1964 = vmax.xlane.f32.xlu1 %v1963_v1  ;;  %v1960_v43 = vpop.f32.mrf.mxu1 }
 0x2ac   :  { %v1966_v44 = vsel %vm1911_vm3, %v1960_v43, -inf }
 0x2b3   :  { %1967 = vmax.xlane.f32.xlu1 %v1966_v44 }
 0x2cc   :  { %2071 = vrot.lane.b32.xlu1 %v4479_v25, %s4068_s30 }
 0x2d4   :  { %2099 = vrot.lane.b32.xlu1 %v4484_v26, %s4068_s30 }
 0x2dc   :  { %2233 = vrot.lane.b32.xlu1 %v4479_v25, %s4069_s0 }
 0x31e   :  { %v1965_v45 = vpop.xlane.xlu1 %1964 }
 0x31f   :  { %v1969_v46 = vsub.f32 %v1933_v42, %v1965_v45 }
 0x321   :  { %v1971_v47 = vmul.f32 1.442695, %v1969_v46 }
 0x323   :  { %3809 = vpow2.f32 %v1971_v47 }
 0x326   :  { %v1968_v0 = vpop.xlane.xlu1 %1967 }
 0x327   :  { %v1970_v48 = vsub.f32 %v1960_v43, %v1968_v0 }
 0x329   :  { %v3810_v49 = vpop.eup %3809  ;;  %v1973_v50 = vmul.f32 1.442695, %v1970_v48 }
 0x32a   :  { %v1975_v51 = vsel %vm1911_vm3, %v3810_v49, 0.0 }
 0x32b   :  { %3811 = vpow2.f32 %v1973_v50  ;;  %1976 = vadd.xlane.f32.xlu2 %v1975_v51 }
 0x331   :  { %v3812_v53 = vpop.eup %3811 }
 0x332   :  { %v1978_v54 = vsel %vm1911_vm3, %v3812_v53, 0.0 }
 0x333   :  { %1979 = vadd.xlane.f32.xlu0 %v1978_v54 }
 0x33e   :  { %v2072_v55 = vpop.permute.xlu1 %2071 }
 0x33f   :  { %3555 = vmatpush.xpose.msk.msrb.mxu3 %vm1911_vm3, %v2072_v55 }
 0x343   :  { %2069 = vrot.lane.b32.xlu2 %v4479_v25, %s4070_s8 }
 0x346   :  { %v2100_v56 = vpop.permute.xlu1 %2099 }
 0x34b   :  { %2011 = vrot.lane.b32.xlu2 %v4484_v26, %s4066_s6 }
 0x34e   :  { %v2234_v57 = vpop.permute.xlu1 %2233 }
 0x34f   :  { %3563 = vmatpush.xpose.msk.msrb.mxu1 %vm1911_vm3, %v2234_v57  ;;  %v2361_v57 = vld [vmem:[%s4690_s10 + $0x10] sm:$0xff] }
 0x353   :  { %2097 = vrot.lane.b32.xlu2 %v4484_v26, %s4070_s8 }
 0x35b   :  { %2231 = vrot.lane.b32.xlu2 %v4479_v25, %s4071_s1 }
 0x39e   :  { %v1977_v58 = vpop.xlane.xlu2 %1976 }
 0x39f   :  { %3813 = vrcp.f32 %v1977_v58  ;;  %v4567_v58 = vld [vmem:[%s4694_s14] sm:$0x3f]  ;;  %s4076_s14 = smov 40  }
 0x3a5   :  { %v3814_v59 = vpop.eup %3813 }
 0x3a6   :  { %v1983_v60 = vmul.f32 %v3814_v59, %v3810_v49  ;;  %v2070_v38 = vpop.permute.xlu2 %2069  ;;  %v1980_v39 = vpop.xlane.xlu0 %1979  ;;  %v1907_v59 = vperm.slane %v4567_v58, 0 }
 0x3a7   :  { %3815 = vrcp.f32 %v1980_v39 }
 0x3a8   :  { %3551 = vmatmul.msk.f32.vlgmr.msra.gmra.mxu3 %vm1911_vm3, %v1983_v60 }
 0x3ad   :  { %v3816_v62 = vpop.eup %3815 }
 0x3ae   :  { %v1984_v63 = vmul.f32 %v3816_v62, %v3812_v53  ;;  %v2012_v3 = vpop.permute.xlu2 %2011 }
 0x3af   :  { %2032 = vmatpush.msrb.mxu0 %v2012_v3 }
 0x3b0   :  { %3552 = vmatmul.msk.f32.vlgmr.msrb.gmra.mxu0 %vm1911_vm3, %v1984_v63  ;;  %3556 = vmatmul.msk.f32.vlgmr.msrb.gmra.mxu3 %vm1911_vm3, %v2070_v38 }
 0x3b1   :  { %3557 = vmatpush.xpose.msk.msra.mxu0 %vm1911_vm3, %v2100_v56 }
 0x3b5   :  { %2221 = vmatpush.msrb.mxu0 %v2199_v29 }
 0x3b6   :  { %v2098_v4 = vpop.permute.xlu2 %2097 }
 0x3b8   :  { %3558 = vmatmul.msk.f32.vlgmr.msra.gmra.mxu0 %vm1911_vm3, %v2098_v4 }
 0x3be   :  { %v2232_v13 = vpop.permute.xlu2 %2231 }
 0x42b   :  { %v2008_v5 = vpop.f32.mrf.mxu3 }
 0x42c   :  { %3553 = vmatmul.msk.f32.vlgmr.msra.gmra.mxu1 %vm1911_vm3, %v2008_v5 }
 0x42d   :  { %v2034_v6 = vpop.f32.mrf.mxu0 }
 0x433   :  { %v2094_v7 = vpop.f32.mrf.mxu3 }
 0x434   :  { %3554 = vmatmul.msk.f32.gmra.mxu1 %vm1911_vm3, %v2034_v6  ;;  %v2125_v10 = vsel %vm1911_vm3, %v2094_v7, -inf }
 0x435   :  { %2126 = vmax.xlane.f32.xlu1 %v2125_v10  ;;  %v2122_v11 = vpop.f32.mrf.mxu0 }
 0x436   :  { %v2128_v12 = vsel %vm1911_vm3, %v2122_v11, -inf }
 0x437   :  { %2129 = vmax.xlane.f32.xlu0 %v2128_v12 }
 0x43c   :  { %3564 = vmatmul.msk.f32.vlgmr.msrb.gmra.mxu1 %vm1911_vm3, %v2232_v13 }
 0x4a8   :  { %v2127_v14 = vpop.xlane.xlu1 %2126 }
 0x4a9   :  { %v2131_v15 = vsub.f32 %v2094_v7, %v2127_v14  ;;  %v4524_v16 = vpop.f32.mrf.mxu1 }
 0x4aa   :  { %v2130_v17 = vpop.xlane.xlu0 %2129  ;;  %v2067_v38 = vadd.f32 %v4524_v16, %v1907_v59  ;;  %v3801_v16 = vpack.i.bf16 %v4484_v26, %v4479_v25 }
 0x4ab   :  { %v2133_v9 = vmul.f32 1.442695, %v2131_v15  ;;  %v2132_v19 = vsub.f32 %v2122_v11, %v2130_v17 }
 0x4ad   :  { %3817 = vpow2.f32 %v2133_v9  ;;  %v2135_v18 = vmul.f32 1.442695, %v2132_v19 }
 0x4af   :  { %3819 = vpow2.f32 %v2135_v18 }
 0x4b1   :  { %v4526_v20 = vpop.f32.mrf.mxu1 }
 0x4b2   :  { %v2068_v7 = vadd.f32 %v4526_v20, %v1907_v59 }
 0x4b3   :  { %v3818_v21 = vpop.eup %3817 }
 0x4b4   :  { %v2137_v22 = vsel %vm1911_vm3, %v3818_v21, 0.0 }
 0x4b5   :  { %v3820_v23 = vpop.eup %3819  ;;  %2138 = vadd.xlane.f32.xlu2 %v2137_v22 }
 0x4b6   :  { %v2140_v24 = vsel %vm1911_vm3, %v3820_v23, 0.0 }
 0x4b7   :  { %2141 = vadd.xlane.f32.xlu0 %v2140_v24 }
 0x4b9   :  { %v2256_v8 = vpop.f32.mrf.mxu1 }
 0x4ba   :  { %v2287_v27 = vsel %vm1911_vm3, %v2256_v8, -inf }
 0x4bb   :  { %2288 = vmax.xlane.f32.xlu1 %v2287_v27 }
 0x4cb   :  { %2147 = vrot.lane.b32.xlu0 %v4479_v25, %s4072_s17 }
 0x4cd   :  { %2261 = vrot.lane.b32.xlu2 %v4484_v26, %s4069_s0 }
 0x4d3   :  { %2173 = vrot.lane.b32.xlu0 %v4484_v26, %s4072_s17 }
 0x4d4   :  { %2309 = vrot.lane.b32.xlu1 %v4479_v25, %s4073_s18 }
 0x4d5   :  { %2259 = vrot.lane.b32.xlu2 %v4484_v26, %s4071_s1 }
 0x4dc   :  { %2395 = vrot.lane.b32.xlu1 %v4479_v25, %s4074_s19 }
 0x4dd   :  { %2393 = vrot.lane.b32.xlu2 %v4479_v25, %s4075_s2 }
 0x4e4   :  { %2423 = vrot.lane.b32.xlu1 %v4484_v26, %s4074_s19 }
 0x528   :  { %v2139_v37 = vpop.xlane.xlu2 %2138 }
 0x52a   :  { %v2142_v31 = vpop.xlane.xlu0 %2141 }
 0x52e   :  { %v2289_v28 = vpop.xlane.xlu1 %2288 }
 0x52f   :  { %v2293_v36 = vsub.f32 %v2256_v8, %v2289_v28 }
 0x530   :  { %v2262_v40 = vpop.permute.xlu2 %2261 }
 0x531   :  { %v2295_v30 = vmul.f32 1.442695, %v2293_v36 }
 0x533   :  { %3821 = vpow2.f32 %v2295_v30 }
 0x534   :  { %3823 = vrcp.f32 %v2139_v37 }
 0x535   :  { %3825 = vrcp.f32 %v2142_v31 }
 0x538   :  { %v2260_v45 = vpop.permute.xlu2 %2259 }
 0x539   :  { %v3822_v32 = vpop.eup %3821 }
 0x53a   :  { %v3824_v33 = vpop.eup %3823  ;;  %v2299_v34 = vsel %vm1911_vm3, %v3822_v32, 0.0 }
 0x53b   :  { %2300 = vadd.xlane.f32.xlu0 %v2299_v34  ;;  %v2145_v41 = vmul.f32 %v3824_v33, %v3818_v21  ;;  %v3826_v1 = vpop.eup %3825 }
 0x53c   :  { %v2146_v43 = vmul.f32 %v3826_v1, %v3820_v23 }
 0x53d   :  { %v2148_v42 = vpop.permute.xlu0 %2147 }
 0x53e   :  { %2168 = vmatpush.msrb.mxu2 %v2148_v42  ;;  %v2523_v42 = vld [vmem:[%s4690_s10 + $0x18] sm:$0xff]  ;;  %s2755_s10 = sshll.u32 %s4695_s15, 4  ;;  %s2756_s10 = int_to_ptr.hbm [resolvable:$true] %s2755_s10 }
 0x53f   :  { %3559 = vmatmul.msk.f32.vlgmr.msrb.gmra.mxu2 %vm1911_vm3, %v2145_v41 }
 0x540   :  { %3565 = vmatpush.xpose.msk.msra.mxu2 %vm1911_vm3, %v2262_v40  ;;  %v2394_v51 = vpop.permute.xlu2 %2393 }
 0x544   :  { %2383 = vmatpush.msrb.mxu2 %v2361_v57 }
 0x545   :  { %v2174_v44 = vpop.permute.xlu0 %2173 }
 0x546   :  { %2194 = vmatpush.msra.mxu3 %v2174_v44  ;;  %v2310_v46 = vpop.permute.xlu1 %2309 }
 0x547   :  { %3560 = vmatmul.msk.f32.vlgmr.msra.gmra.mxu3 %vm1911_vm3, %v2146_v43  ;;  %3566 = vmatmul.msk.f32.vlgmr.msra.gmra.mxu2 %vm1911_vm3, %v2260_v45 }
 0x548   :  { %2330 = vmatpush.msrb.mxu3 %v2310_v46 }
 0x54e   :  { %v2396_v47 = vpop.permute.xlu1 %2395 }
 0x54f   :  { %2421 = vrot.lane.b32.xlu0 %v4484_v26, %s4075_s2  ;;  %3571 = vmatpush.xpose.msk.msra.mxu3 %vm1911_vm3, %v2396_v47  ;;  %v1864_v47 = vperm.slane %v4490_v35, 0 }
 0x556   :  { %v2424_v0 = vpop.permute.xlu1 %2423 }
 0x557   :  { %3573 = vmatpush.xpose.msk.msra.mxu0 %vm1911_vm3, %v2424_v0 }
 0x5ae   :  { %v2301_v48 = vpop.xlane.xlu0 %2300 }
 0x5af   :  { %3827 = vrcp.f32 %v2301_v48 }
 0x5b5   :  { %v3828_v49 = vpop.eup %3827 }
 0x5b6   :  { %v2307_v50 = vmul.f32 %v3828_v49, %v3822_v32 }
 0x5b8   :  { %3567 = vmatmul.msk.f32.vlgmr.msrb.gmra.mxu3 %vm1911_vm3, %v2307_v50 }
 0x5c0   :  { %3572 = vmatmul.msk.f32.vlgmr.msra.gmra.mxu3 %vm1911_vm3, %v2394_v51 }
 0x5c1   :  { %v2422_v56 = vpop.permute.xlu0 %2421 }
 0x5c2   :  { %v2170_v52 = vpop.f32.mrf.mxu2 }
 0x5c3   :  { %3561 = vmatmul.msk.f32.vlgmr.msrb.gmra.mxu0 %vm1911_vm3, %v2170_v52  ;;  %v1863_v52 = vrot.slane %v4490_v35, 1 }
 0x5c4   :  { %2545 = vmatpush.msrb.mxu0 %v2523_v42 }
 0x5ca   :  { %v2196_v53 = vpop.f32.mrf.mxu3  ;;  %v2284_v54 = vpop.f32.mrf.mxu2 }
 0x5cb   :  { %3562 = vmatmul.msk.f32.gmra.mxu0 %vm1911_vm3, %v2196_v53  ;;  %v2290_v55 = vsel %vm1911_vm3, %v2284_v54, -inf }
 0x5cc   :  { %2291 = vmax.xlane.f32.xlu2 %v2290_v55  ;;  %v4603_v55 = vperm.slane %v1863_v52, 0 }
 0x5d3   :  { %3574 = vmatmul.msk.f32.vlgmr.msra.gmra.mxu0 %vm1911_vm3, %v2422_v56 }
 0x63b   :  { %v2332_v60 = vpop.f32.mrf.mxu3 }
 0x63c   :  { %3569 = vmatmul.msk.f32.vlgmr.msrb.gmra.mxu2 %vm1911_vm3, %v2332_v60 }
 0x63f   :  { %v2292_v39 = vpop.xlane.xlu2 %2291 }
 0x640   :  { %v2294_v62 = vsub.f32 %v2284_v54, %v2292_v39  ;;  %v2223_v63 = vpop.f32.mrf.mxu0 }
 0x641   :  { %v4572_v3 = vadd.f32 %v2223_v63, %v2067_v38 }
 0x642   :  { %v2297_v4 = vmul.f32 1.442695, %v2294_v62 }
 0x643   :  { %v2418_v5 = vpop.f32.mrf.mxu3 }
 0x644   :  { %3829 = vpow2.f32 %v2297_v4  ;;  %v2449_v6 = vsel %vm1911_vm3, %v2418_v5, -inf }
 0x645   :  { %2450 = vmax.xlane.f32.xlu1 %v2449_v6 }
 0x648   :  { %v2226_v10 = vpop.f32.mrf.mxu0 }
 0x649   :  { %v4576_v11 = vadd.f32 %v2226_v10, %v2068_v7 }
 0x64a   :  { %v3830_v12 = vpop.eup %3829 }
 0x64b   :  { %v2302_v13 = vsel %vm1911_vm3, %v3830_v12, 0.0 }
 0x64c   :  { %2303 = vadd.xlane.f32.xlu2 %v2302_v13 }
 0x650   :  { %v2446_v14 = vpop.f32.mrf.mxu0 }
 0x651   :  { %v2452_v15 = vsel %vm1911_vm3, %v2446_v14, -inf }
 0x652   :  { %2453 = vmax.xlane.f32.xlu0 %v2452_v15 }
 0x664   :  { %2335 = vrot.lane.b32.xlu2 %v4484_v26, %s4073_s18 }
 0x666   :  { %3802 = vrot.lane.b32.xlu0 %v3801_v16, %s4076_s14  ;;  %v2619_v16 = vld [vmem:[%s4691_s11 + $0x18] sm:$0xff] }
 0x6b8   :  { %v2451_v17 = vpop.xlane.xlu1 %2450 }
 0x6b9   :  { %v2455_v9 = vsub.f32 %v2418_v5, %v2451_v17  ;;  %v2618_v17 = vld [vmem:[%s4691_s11 + $0x10] sm:$0xff] }
 0x6bb   :  { %v2457_v19 = vmul.f32 1.442695, %v2455_v9  ;;  %v2617_v9 = vld [vmem:[%s4691_s11 + $0x8] sm:$0xff] }
 0x6bd   :  { %3831 = vpow2.f32 %v2457_v19  ;;  %v2616_v19 = vld [vmem:[%s4691_s11] sm:$0xff] }
 0x6bf   :  { %v2304_v18 = vpop.xlane.xlu2 %2303  ;;  %v2385_v44 = vpop.f32.mrf.mxu2 }
 0x6c0   :  { %3833 = vrcp.f32 %v2304_v18  ;;  %v2391_v45 = vadd.f32 %v2385_v44, %v4572_v3 }
 0x6c3   :  { %v3832_v20 = vpop.eup %3831 }
 0x6c4   :  { %v2461_v21 = vsel %vm1911_vm3, %v3832_v20, 0.0 }
 0x6c5   :  { %v2454_v22 = vpop.xlane.xlu0 %2453  ;;  %2462 = vadd.xlane.f32.xlu1 %v2461_v21 }
 0x6c6   :  { %v3834_v23 = vpop.eup %3833  ;;  %v2456_v24 = vsub.f32 %v2446_v14, %v2454_v22 }
 0x6c7   :  { %v2308_v8 = vmul.f32 %v3834_v23, %v3830_v12  ;;  %v2336_v27 = vpop.permute.xlu2 %2335 }
 0x6c8   :  { %v2459_v28 = vmul.f32 1.442695, %v2456_v24  ;;  %2356 = vmatpush.msra.mxu1 %v2336_v27  ;;  %v2662_v27 = vld [vmem:[%s4693_s13 + $0x38] sm:$0xff] }
 0x6c9   :  { %3568 = vmatmul.msk.f32.vlgmr.msra.gmra.mxu1 %vm1911_vm3, %v2308_v8  ;;  %2678 = vmatpush.msra.mxu2 %v2662_v27 }
 0x6ca   :  { %3835 = vpow2.f32 %v2459_v28  ;;  %v2661_v28 = vld [vmem:[%s4693_s13 + $0x30] sm:$0xff] }
 0x6cb   :  { %2679 = vmatpush.msra.mxu2 %v2661_v28 }
 0x6d0   :  { %v3836_v25 = vpop.eup %3835 }
 0x6d1   :  { %v2464_v26 = vsel %vm1911_vm3, %v3836_v25, 0.0 }
 0x6d2   :  { %2465 = vadd.xlane.f32.xlu1 %v2464_v26  ;;  %v2660_v26 = vld [vmem:[%s4693_s13 + $0x28] sm:$0xff] }
 0x6d3   :  { %2680 = vmatpush.msra.mxu2 %v2660_v26 }
 0x6d8   :  { %v3803_v36 = vpop.permute.xlu0 %3802 }
 0x6d9   :  { %v3805_v29 = vunpack.i.h.bf16 %v3803_v36  ;;  %v3804_v37 = vunpack.i.l.bf16 %v3803_v36 }
 0x6db   :  { %2492 = vmatpush.msrb.mxu1 %v3804_v37  ;;  %2518 = vmatpush.msrb.mxu3 %v3805_v29 }
 0x6dd   :  { %2642 = vmatpush.msra.mxu1 %v2619_v16 }
 0x6df   :  { %2643 = vmatpush.msra.mxu1 %v2618_v17 }
 0x6e1   :  { %2644 = vmatpush.msra.mxu1 %v2617_v9 }
 0x6e3   :  { %2645 = vmatpush.msra.mxu1 %v2616_v19 }
 0x738   :  { %v2463_v30 = vpop.xlane.xlu1 %2462 }
 0x739   :  { %3837 = vrcp.f32 %v2463_v30  ;;  %v2659_v30 = vld [vmem:[%s4693_s13 + $0x20] sm:$0xff] }
 0x73a   :  { %2681 = vmatpush.msra.mxu2 %v2659_v30 }
 0x73f   :  { %v3838_v31 = vpop.eup %3837 }
 0x740   :  { %v2469_v32 = vmul.f32 %v3838_v31, %v3832_v20  ;;  %v2610_v31 = vperm.slane %v4567_v58, 2 }
 0x742   :  { %3575 = vmatmul.msk.f32.vlgmr.msrb.gmra.mxu1 %vm1911_vm3, %v2469_v32 }
 0x745   :  { %v2466_v33 = vpop.xlane.xlu1 %2465 }
 0x746   :  { %3839 = vrcp.f32 %v2466_v33  ;;  %v2358_v34 = vpop.f32.mrf.mxu1 }
 0x747   :  { %3570 = vmatmul.msk.f32.gmra.mxu2 %vm1911_vm3, %v2358_v34  ;;  %v2658_v34 = vld [vmem:[%s4693_s13 + $0x18] sm:$0xff] }
 0x748   :  { %2682 = vmatpush.msra.mxu2 %v2658_v34 }
 0x74c   :  { %v3840_v40 = vpop.eup %3839 }
 0x74d   :  { %v2470_v41 = vmul.f32 %v3840_v40, %v3836_v25 }
 0x74f   :  { %3576 = vmatmul.msk.f32.vlgmr.msrb.gmra.mxu3 %vm1911_vm3, %v2470_v41  ;;  %v2613_v41 = vperm.slane %v4567_v58, 3 }
 0x7bf   :  { %v2494_v1 = vpop.f32.mrf.mxu1 }
 0x7c0   :  { %3577 = vmatmul.msk.f32.vlgmr.msrb.gmra.mxu0 %vm1911_vm3, %v2494_v1 }
 0x7ca   :  { %v2388_v51 = vpop.f32.mrf.mxu2 }
 0x7cb   :  { %v2392_v53 = vadd.f32 %v2388_v51, %v4576_v11 }
 0x7d2   :  { %v2520_v43 = vpop.f32.mrf.mxu3 }
 0x7d3   :  { %3578 = vmatmul.msk.f32.gmra.mxu0 %vm1911_vm3, %v2520_v43 }
 0x83d   :  { %v2547_v46 = vpop.f32.mrf.mxu0 }
 0x83e   :  { %v2553_v0 = vadd.f32 %v2547_v46, %v2391_v45 }
 0x840   :  { %v2555_v48 = vadd.f32 %v2553_v0, %v1864_v47 }
 0x842   :  { %v2557_v49 = vadd.f32 %v2555_v48, %v4400_v61  ;;  %v4077_v61 = vmov 32.0  }
 0x843   :  { %3841 = vrcp.f32 %v4077_v61 }
 0x844   :  { %v2559_v50 = vsel %vm1876_vm2, %v2557_v49, 0.0 }
 0x845   :  { %2560 = vadd.xlane.f32.xlu1 %v2559_v50 }
 0x849   :  { %v3842_v38 = vpop.eup %3841 }
 0x84a   :  { %v2566_v39 = vmul.f32 32.0, %v3842_v38  ;;  %vm2570_vm4 = vweird.f32 %v3842_v38 }
 0x84c   :  { %v2567_v62 = vsub.f32 1.0, %v2566_v39 }
 0x84e   :  { %v2568_v63 = vmul.f32 %v3842_v38, %v2567_v62 }
 0x850   :  { %v2550_v54 = vpop.f32.mrf.mxu0  ;;  %v2569_v3 = vadd.f32 %v3842_v38, %v2568_v63  ;;  %v2663_v63 = vperm.slane %v4567_v58, 1 }
 0x851   :  { %v2554_v56 = vadd.f32 %v2550_v54, %v2392_v53  ;;  %v2657_v53 = vld [vmem:[%s4693_s13 + $0x10] sm:$0xff]  ;;  %v2656_v54 = vld [vmem:[%s4693_s13 + $0x8] sm:$0xff] }
 0x852   :  { %v4608_v4 = vsel %vm2570_vm4, %v3842_v38, %v2569_v3  ;;  %2683 = vmatpush.msra.mxu2 %v2657_v53 }
 0x853   :  { %v2556_v57 = vadd.f32 %v2554_v56, %v4603_v55  ;;  %v2655_v56 = vld [vmem:[%s4693_s13] sm:$0xff]  ;;  %s4078_s13 = smov [#allocation14]  }
 0x854   :  { %2684 = vmatpush.msra.mxu2 %v2656_v54  ;;  %s2753_s14 = sshll.u32 %s4078_s13, 4  ;;  %s2754_s14 = int_to_ptr.vmem [resolvable:$true] %s2753_s14 }
 0x855   :  { %v2558_v59 = vadd.f32 %v2556_v57, %v4416_v2  ;;  %v3808_v57 = vld [vmem:[#allocation13] ss:$0 sm:$0xff] }
 0x856   :  { %2685 = vmatpush.msra.mxu2 %v2655_v56 }
 0x857   :  { %v2562_v60 = vsel %vm1876_vm2, %v2558_v59, 0.0 }
 0x858   :  { %2563 = vadd.xlane.f32.xlu1 %v2562_v60 }
 0x8b8   :  { %v2561_v5 = vpop.xlane.xlu1 %2560 }
 0x8b9   :  { %v2572_v6 = vmul.f32 %v4608_v4, %v2561_v5 }
 0x8bb   :  { %v2574_v7 = vsub.f32 %v2557_v49, %v2572_v6 }
 0x8bd   :  { %v2576_v10 = vmul.f32 %v2574_v7, %v2574_v7 }
 0x8bf   :  { %v2578_v2 = vsel %vm1876_vm2, %v2576_v10, 0.0 }
 0x8c0   :  { %2579 = vadd.xlane.f32.xlu2 %v2578_v2 }
 0x8cb   :  { %v2564_v11 = vpop.xlane.xlu1 %2563 }
 0x8cc   :  { %v2573_v12 = vmul.f32 %v4608_v4, %v2564_v11 }
 0x8ce   :  { %v2575_v13 = vsub.f32 %v2558_v59, %v2573_v12 }
 0x8d0   :  { %v2577_v14 = vmul.f32 %v2575_v13, %v2575_v13 }
 0x8d2   :  { %v2581_v15 = vsel %vm1876_vm2, %v2577_v14, 0.0 }
 0x8d3   :  { %2582 = vadd.xlane.f32.xlu1 %v2581_v15 }
 0x933   :  { %v2580_v18 = vpop.xlane.xlu2 %2579 }
 0x934   :  { %v2584_v20 = vmul.f32 %v2580_v18, %v4608_v4 }
 0x936   :  { %v2586_v21 = vadd.f32 1e-05, %v2584_v20 }
 0x938   :  { %3843 = vrsqrt.f32 %v2586_v21  ;;  %vm2594_vm6 = vweird.f32 %v2586_v21 }
 0x93e   :  { %v3844_v22 = vpop.eup %3843 }
 0x93f   :  { %v2589_v23 = vmul.f32 %v3844_v22, %v2586_v21  ;;  %vm2595_vm5 = vweird.f32 %v3844_v22 }
 0x940   :  { %vm2596_vm7 = vmor %vm2594_vm6, %vm2595_vm5 }
 0x941   :  { %v2590_v24 = vmul.f32 %v3844_v22, %v2589_v23 }
 0x943   :  { %v2591_v8 = vmul.f32 0.5, %v2590_v24 }
 0x945   :  { %v2592_v25 = vsub.f32 1.5, %v2591_v8 }
 0x946   :  { %v2583_v36 = vpop.xlane.xlu1 %2582 }
 0x947   :  { %v2593_v29 = vmul.f32 %v3844_v22, %v2592_v25  ;;  %v2585_v37 = vmul.f32 %v2583_v36, %v4608_v4 }
 0x949   :  { %v2597_v32 = vsel %vm2596_vm7, %v3844_v22, %v2593_v29  ;;  %v2587_v33 = vadd.f32 1e-05, %v2585_v37  ;;  %v2741_v37 = vperm.slane %v4567_v58, 4 }
 0x94a   :  { %v2608_v40 = vmul.f32 %v2597_v32, %v2574_v7 }
 0x94b   :  { %3845 = vrsqrt.f32 %v2587_v33  ;;  %vm2604_vm9 = vweird.f32 %v2587_v33 }
 0x94c   :  { %v2611_v42 = vmul.f32 %v2610_v31, %v2608_v40 }
 0x94e   :  { %v2614_v1 = vadd.f32 %v2613_v41, %v2611_v42 }
 0x950   :  { %3579 = vmatmul.msk.f32.vlgmr.msra.gmra.mxu1 %vm1876_vm2, %v2614_v1 }
 0x951   :  { %v3846_v43 = vpop.eup %3845 }
 0x952   :  { %v2599_v44 = vmul.f32 %v3846_v43, %v2587_v33  ;;  %vm2605_vm8 = vweird.f32 %v3846_v43  ;;  %v2744_v33 = vperm.slane %v4567_v58, 5 }
 0x953   :  { %vm2606_vm10 = vmor %vm2604_vm9, %vm2605_vm8 }
 0x954   :  { %v2600_v45 = vmul.f32 %v3846_v43, %v2599_v44 }
 0x956   :  { %v2601_v46 = vmul.f32 0.5, %v2600_v45 }
 0x958   :  { %v2602_v0 = vsub.f32 1.5, %v2601_v46 }
 0x95a   :  { %v2603_v48 = vmul.f32 %v3846_v43, %v2602_v0 }
 0x95c   :  { %v2607_v49 = vsel %vm2606_vm10, %v3846_v43, %v2603_v48 }
 0x95d   :  { %v2609_v50 = vmul.f32 %v2607_v49, %v2575_v13 }
 0x95f   :  { %v2612_v51 = vmul.f32 %v2610_v31, %v2609_v50 }
 0x961   :  { %v2615_v52 = vadd.f32 %v2613_v41, %v2612_v51 }
 0x963   :  { %3580 = vmatmul.msk.f32.gmra.mxu1 %vm1876_vm2, %v2615_v52 }
 0x9cd   :  { %v2647_v59 = vpop.f32.mrf.mxu1 }
 0x9ce   :  { %v2648_v60 = vadd.f32 %v3808_v57, %v2647_v59 }
 0x9d0   :  { %v2653_v61 = vmax.f32 %v2648_v60, 0.0 }
 0x9d2   :  { %3581 = vmatmul.msk.f32.vlgmr.msra.gmra.mxu2 %vm325_vm1, %v2653_v61 }
 0x9e0   :  { %v2650_v38 = vpop.f32.mrf.mxu1 }
 0x9e1   :  { %v2651_v39 = vadd.f32 %v3808_v57, %v2650_v38 }
 0x9e3   :  { %v2654_v62 = vmax.f32 %v2651_v39, 0.0 }
 0x9e5   :  { %3582 = vmatmul.msk.f32.gmra.mxu2 %vm325_vm1, %v2654_v62 }
 0xa55   :  { %v2687_v3 = vpop.f32.mrf.mxu2 }
 0xa56   :  { %v2688_v5 = vadd.f32 %v2687_v3, %v2663_v63 }
 0xa58   :  { %v2693_v6 = vadd.f32 %v2688_v5, %v1864_v47 }
 0xa5a   :  { %v2695_v7 = vadd.f32 %v2693_v6, %v2614_v1 }
 0xa5c   :  { %v2697_v10 = vsel %vm1876_vm2, %v2695_v7, 0.0 }
 0xa5d   :  { %2698 = vadd.xlane.f32.xlu0 %v2697_v10 }
 0xa68   :  { %v2690_v2 = vpop.f32.mrf.mxu2 }
 0xa69   :  { %v2691_v11 = vadd.f32 %v2690_v2, %v2663_v63 }
 0xa6b   :  { %v2694_v12 = vadd.f32 %v2691_v11, %v4603_v55 }
 0xa6d   :  { %v2696_v13 = vadd.f32 %v2694_v12, %v2615_v52 }
 0xa6f   :  { %v2700_v14 = vsel %vm1876_vm2, %v2696_v13, 0.0 }
 0xa70   :  { %2701 = vadd.xlane.f32.xlu1 %v2700_v14 }
 0xad0   :  { %v2699_v15 = vpop.xlane.xlu0 %2698 }
 0xad1   :  { %v2703_v16 = vmul.f32 %v2699_v15, %v4608_v4 }
 0xad3   :  { %v2705_v17 = vsub.f32 %v2695_v7, %v2703_v16 }
 0xad5   :  { %v2707_v9 = vmul.f32 %v2705_v17, %v2705_v17 }
 0xad7   :  { %v2709_v35 = vsel %vm1876_vm2, %v2707_v9, 0.0 }
 0xad8   :  { %2710 = vadd.xlane.f32.xlu1 %v2709_v35 }
 0xae3   :  { %v2702_v47 = vpop.xlane.xlu1 %2701 }
 0xae4   :  { %v2704_v19 = vmul.f32 %v2702_v47, %v4608_v4 }
 0xae6   :  { %v2706_v18 = vsub.f32 %v2696_v13, %v2704_v19 }
 0xae8   :  { %v2708_v20 = vmul.f32 %v2706_v18, %v2706_v18 }
 0xaea   :  { %v2712_v21 = vsel %vm1876_vm2, %v2708_v20, 0.0 }
 0xaeb   :  { %2713 = vadd.xlane.f32.xlu1 %v2712_v21 }
 0xb4b   :  { %v2711_v55 = vpop.xlane.xlu1 %2710 }
 0xb4c   :  { %v2715_v22 = vmul.f32 %v2711_v55, %v4608_v4 }
 0xb4e   :  { %v2717_v23 = vadd.f32 1e-05, %v2715_v22 }
 0xb50   :  { %3847 = vrsqrt.f32 %v2717_v23  ;;  %vm2725_vm12 = vweird.f32 %v2717_v23 }
 0xb56   :  { %v3848_v24 = vpop.eup %3847 }
 0xb57   :  { %v2720_v8 = vmul.f32 %v3848_v24, %v2717_v23  ;;  %vm2726_vm11 = vweird.f32 %v3848_v24 }
 0xb58   :  { %vm2727_vm13 = vmor %vm2725_vm12, %vm2726_vm11 }
 0xb59   :  { %v2721_v27 = vmul.f32 %v3848_v24, %v2720_v8 }
 0xb5b   :  { %v2722_v28 = vmul.f32 0.5, %v2721_v27 }
 0xb5d   :  { %v2723_v25 = vsub.f32 1.5, %v2722_v28 }
 0xb5e   :  { %v2714_v26 = vpop.xlane.xlu1 %2713 }
 0xb5f   :  { %v2724_v36 = vmul.f32 %v3848_v24, %v2723_v25  ;;  %v2716_v29 = vmul.f32 %v2714_v26, %v4608_v4 }
 0xb61   :  { %v2728_v30 = vsel %vm2727_vm13, %v3848_v24, %v2724_v36  ;;  %v2718_v31 = vadd.f32 1e-05, %v2716_v29 }
 0xb62   :  { %v2739_v32 = vmul.f32 %v2728_v30, %v2705_v17 }
 0xb63   :  { %3849 = vrsqrt.f32 %v2718_v31  ;;  %vm2735_vm15 = vweird.f32 %v2718_v31 }
 0xb64   :  { %v2742_v34 = vmul.f32 %v2741_v37, %v2739_v32 }
 0xb66   :  { %v2745_v40 = vadd.f32 %v2744_v33, %v2742_v34 }
 0xb68   :  { %2747 = vst.msk [vmem:[#allocation14] sm:$0xff] %vm1876_vm2, %v2745_v40 }
 0xb69   :  { %v3850_v41 = vpop.eup %3849 }
 0xb6a   :  { %v2730_v42 = vmul.f32 %v3850_v41, %v2718_v31  ;;  %vm2736_vm14 = vweird.f32 %v3850_v41 }
 0xb6b   :  { %vm2737_vm0 = vmor %vm2735_vm15, %vm2736_vm14 }
 0xb6c   :  { %v2731_v1 = vmul.f32 %v3850_v41, %v2730_v42 }
 0xb6e   :  { %v2732_v43 = vmul.f32 0.5, %v2731_v1 }
 0xb70   :  { %v2733_v44 = vsub.f32 1.5, %v2732_v43 }
 0xb72   :  { %v2734_v4 = vmul.f32 %v3850_v41, %v2733_v44 }
 0xb74   :  { %v2738_v45 = vsel %vm2737_vm0, %v3850_v41, %v2734_v4 }
 0xb75   :  { %v2740_v46 = vmul.f32 %v2738_v45, %v2706_v18 }
 0xb77   :  { %v2743_v58 = vmul.f32 %v2741_v37, %v2740_v46 }
 0xb79   :  { %v2746_v0 = vadd.f32 %v2744_v33, %v2743_v58 }
 0xb7b   :  { %2748 = vst.msk [vmem:[#allocation14 + $0x8] sm:$0xff] %vm1876_vm2, %v2746_v0 }
 0xb7c   :  { %2761 = dma.vmem_to_hbm [thread:$0]  %s2754_s14, 256, %s2756_s10, [#allocation4], %s4061_s26, %s4061_s26, %s4062_s27  }
 0xb7d   :  { %4051 = dma.done.wait [#allocation4], 256  }
 0xb7e   :  { %4052 = vsyncadd [#allocation4], 4294967040 }
 0xb7f   :  { %2766 = vsyncpa [#allocation3], 1 }
 0xb80   :  { %2767 = vsyncpa [#allocation6], 1 }
 0xb81   :  { %2768 = vsyncpa [#allocation9], 1 }
 0xb82   :  { %2769 = vsyncpa [#allocation12], 1 }
 0xb83   :  { %2770 = vsyncpa [#allocation4], 1 }

</bundles_post_ra>
